<compile_context>
chip_gen: v7x
topology: tpu7x:2x2x1
jax: 0.10.0
libtpu: 0.0.40
codegen_flags: <defaults>
</compile_context>

<pallas_src>
import functools

import jax
import jax.numpy as jnp
from jax.experimental import pallas as pl
from jax.experimental.pallas import tpu as pltpu


# ------------------------------------------------------------------ fused kernel

def _fused_forward_kernel(patches_ref, w4_ref, b4_ref, s4_ref, h4_ref,
                          w5_ref, b5_ref, s5_ref, h5_ref,
                          w6_ref, b6_ref,
                          bn4_ref, bn5_ref, fc6_ref,
                          *, n, p_spatial, hh):
    # ---- conv4 (3x3 VALID) as ONE matmul over the pre-built im2col slab.
    acc4 = jnp.dot(patches_ref[...], w4_ref[...],
                   preferred_element_type=jnp.float32)           # [(p,b), cout]

    # relu4 then eval-mode bn4 folded into a per-channel affine.
    bn4 = jnp.maximum(acc4 + b4_ref[...], 0.0) * s4_ref[...] + h4_ref[...]
    bn4_ref[...] = bn4                                           # lane-dense output

    # ---- fc5 + relu5 + bn5 from the register-resident bn4 value.
    # Single hoisted bf16 cast; per-spatial LHS slices are static vreg slices
    # (rows p*n : p*n+n) — no VMEM round trip, no per-iteration casts.
    bn4_bf = bn4.astype(jnp.bfloat16)
    acc5 = jnp.zeros((n, hh), jnp.float32)
    for p in range(p_spatial):
        lhs = bn4_bf[p * n:(p + 1) * n, :]                       # [n, cout]
        acc5 = acc5 + jnp.dot(lhs, w5_ref[p],
                              preferred_element_type=jnp.float32)
    bn5 = jnp.maximum(acc5 + b5_ref[...], 0.0) * s5_ref[...] + h5_ref[...]
    bn5_ref[...] = bn5

    # ---- dropout(p=0.0) is identity; fc6 (output padded to 128 lanes).
    fc6_ref[...] = (jnp.dot(bn5.astype(jnp.bfloat16), w6_ref[...],
                            preferred_element_type=jnp.float32) + b6_ref[...])


def _call_fused(patches, pp, *, n, p_spatial, cout, hh, nc_pad):
    m, kpad = patches.shape
    kernel = functools.partial(_fused_forward_kernel,
                               n=n, p_spatial=p_spatial, hh=hh)
    vmem = lambda: pl.BlockSpec(memory_space=pltpu.MemorySpace.VMEM)

    flops = (2 * m * kpad * cout            # conv4
             + 2 * n * (p_spatial * cout) * hh   # fc5
             + 2 * n * hh * nc_pad)         # fc6
    in_bytes = sum(int(a.size) * a.dtype.itemsize
                   for a in (patches, pp["w4"], pp["b4"], pp["s4"], pp["h4"],
                             pp["w5"], pp["b5"], pp["s5"], pp["h5"],
                             pp["w6"], pp["b6"]))
    out_bytes = 4 * (m * cout + n * hh + n * nc_pad)

    return pl.pallas_call(
        kernel,
        out_shape=(
            jax.ShapeDtypeStruct((m, cout), jnp.float32),   # bn4, rows ordered (p, b)
            jax.ShapeDtypeStruct((n, hh), jnp.float32),     # bn5
            jax.ShapeDtypeStruct((n, nc_pad), jnp.float32), # fc6 (lane-padded)
        ),
        in_specs=[vmem() for _ in range(11)],
        out_specs=(vmem(), vmem(), vmem()),
        cost_estimate=pl.CostEstimate(flops=flops, transcendentals=0,
                                      bytes_accessed=in_bytes + out_bytes),
    )(patches,
      pp["w4"], pp["b4"], pp["s4"], pp["h4"],
      pp["w5"], pp["b5"], pp["s5"], pp["h5"],
      pp["w6"], pp["b6"])


# ------------------------------------------------------------------ param prep

def _fold_bn(gamma, beta, running_mean, running_var, eps=1e-5):
    scale = gamma / jnp.sqrt(running_var + eps)
    shift = beta - running_mean * scale
    return scale, shift


def prepare_params(params, *, oh, ow, nc_pad=128):
    """One-time prep: weight layout permutes, K padding, BN folding, bf16 casts."""
    cout, cin = params["conv4_w"].shape[:2]
    hh = params["fc5_w"].shape[0]
    nc = params["fc6_w"].shape[0]
    p_spatial = oh * ow
    f32 = jnp.float32

    # conv4 OIHW -> concatenated im2col weight [9*cin, cout], K padded to a
    # multiple of 256 (full MXU depth, unmasked loads). K index = tap*cin + c.
    k = 9 * cin
    kpad = ((k + 255) // 256) * 256
    w4 = jnp.transpose(params["conv4_w"], (2, 3, 1, 0)).reshape(k, cout)
    w4 = jnp.zeros((kpad, cout), f32).at[:k, :].set(w4)

    # fc5 weight: fold the PyTorch NCHW-flatten permutation; one (cout, hh)
    # slab per spatial position p = r*ow + w.
    w5 = (params["fc5_w"].reshape(hh, cout, oh, ow)
          .transpose(2, 3, 1, 0).reshape(p_spatial, cout, hh))

    # fc6 weight/bias transposed + padded to a lane-dense 128-wide output.
    w6 = jnp.zeros((hh, nc_pad), f32).at[:, :nc].set(params["fc6_w"].T)
    b6 = jnp.zeros((1, nc_pad), f32).at[:, :nc].set(params["fc6_b"])

    s4, h4 = _fold_bn(params["bn4_gamma"], params["bn4_beta"],
                      params["bn4_mean"], params["bn4_var"])
    s5, h5 = _fold_bn(params["bn5_gamma"], params["bn5_beta"],
                      params["bn5_mean"], params["bn5_var"])

    return {
        "w4": w4.astype(jnp.bfloat16),
        "b4": params["conv4_b"].reshape(1, cout).astype(f32),
        "s4": s4.reshape(1, cout).astype(f32),
        "h4": h4.reshape(1, cout).astype(f32),
        "w5": w5.astype(jnp.bfloat16),
        "b5": params["fc5_b"].reshape(1, hh).astype(f32),
        "s5": s5.reshape(1, hh).astype(f32),
        "h5": h5.reshape(1, hh).astype(f32),
        "w6": w6.astype(jnp.bfloat16),
        "b6": b6,
    }


# ------------------------------------------------------------------ forward

@functools.partial(jax.jit, static_argnames=("num_classes",))
def model_forward(x_nchw, prepped, *, num_classes):
    n, cin, h, w = x_nchw.shape
    oh, ow = h - 2, w - 2
    p_spatial = oh * ow
    kpad, cout = prepped["w4"].shape
    hh = prepped["w5"].shape[2]
    nc_pad = prepped["w6"].shape[1]

    # Hoisted im2col: NCHW -> NHWC, 9 static tap slices, rows ordered (p, b),
    # K padded to `kpad`, cast to bf16 — all one XLA fusion feeding the kernel.
    x_nhwc = jnp.transpose(x_nchw, (0, 2, 3, 1))
    taps = [x_nhwc[:, kh:kh + oh, kw:kw + ow, :]
            for kh in range(3) for kw in range(3)]               # each [n,oh,ow,cin]
    patches = jnp.stack(taps, axis=3)                            # [n,oh,ow,9,cin]
    patches = jnp.transpose(patches, (1, 2, 0, 3, 4)).reshape(p_spatial * n, 9 * cin)
    patches = jnp.pad(patches, ((0, 0), (0, kpad - 9 * cin))).astype(jnp.bfloat16)

    bn4_pb, bn5, fc6_pad = _call_fused(patches, prepped, n=n, p_spatial=p_spatial,
                                       cout=cout, hh=hh, nc_pad=nc_pad)
    fc6 = fc6_pad[:, :num_classes]

    # Auxiliary views matching PyTorch layouts (off the class-score hot path).
    bn4_nchw = jnp.transpose(bn4_pb.reshape(oh, ow, n, cout), (2, 3, 0, 1))
    flat = bn4_nchw.reshape(n, cout * p_spatial)
    return {"bn4": bn4_nchw, "flat": flat, "bn5": bn5,
            "fc6": fc6, "class_scores": fc6}


# ------------------------------------------------------------------ params / ref

def init_params(key, in_ch=192, conv_out_ch=256, conv_spatial_out=4,
                num_hidden=128, num_classes=10):
    ks = jax.random.split(key, 12)
    conv_out_size = conv_out_ch * conv_spatial_out * conv_spatial_out
    f32 = jnp.float32
    return {
        "conv4_w": 0.02 * jax.random.normal(ks[0], (conv_out_ch, in_ch, 3, 3), f32),
        "conv4_b": 0.01 * jax.random.normal(ks[1], (conv_out_ch,), f32),
        "bn4_gamma": 1.0 + 0.1 * jax.random.normal(ks[2], (conv_out_ch,), f32),
        "bn4_beta": 0.1 * jax.random.normal(ks[3], (conv_out_ch,), f32),
        "bn4_mean": 0.05 * jax.random.normal(ks[4], (conv_out_ch,), f32),
        "bn4_var": 1.0 + 0.2 * jax.random.uniform(ks[5], (conv_out_ch,), f32),
        "fc5_w": 0.02 * jax.random.normal(ks[6], (num_hidden, conv_out_size), f32),
        "fc5_b": 0.01 * jax.random.normal(ks[7], (num_hidden,), f32),
        "bn5_gamma": 1.0 + 0.1 * jax.random.normal(ks[8], (num_hidden,), f32),
        "bn5_beta": 0.1 * jax.random.normal(ks[9], (num_hidden,), f32),
        "bn5_mean": 0.05 * jax.random.normal(ks[10], (num_hidden,), f32),
        "bn5_var": jnp.ones((num_hidden,), f32),
        "fc6_w": 0.02 * jax.random.normal(ks[11], (num_classes, num_hidden), f32),
        "fc6_b": jnp.zeros((num_classes,), f32),
    }


def model_forward_ref(x_nchw, params):
    """Pure-JAX f32 reference (eval-mode BN) for correctness checking."""
    conv = jax.lax.conv_general_dilated(
        x_nchw, params["conv4_w"], window_strides=(1, 1), padding="VALID",
        dimension_numbers=("NCHW", "OIHW", "NCHW"))
    conv = conv + params["conv4_b"][None, :, None, None]
    relu4 = jnp.maximum(conv, 0.0)
    s4, h4 = _fold_bn(params["bn4_gamma"], params["bn4_beta"],
                      params["bn4_mean"], params["bn4_var"])
    bn4 = relu4 * s4[None, :, None, None] + h4[None, :, None, None]
    flat = bn4.reshape(bn4.shape[0], -1)
    fc5 = flat @ params["fc5_w"].T + params["fc5_b"]
    relu5 = jnp.maximum(fc5, 0.0)
    s5, h5 = _fold_bn(params["bn5_gamma"], params["bn5_beta"],
                      params["bn5_mean"], params["bn5_var"])
    bn5 = relu5 * s5 + h5
    fc6 = bn5 @ params["fc6_w"].T + params["fc6_b"]
    return {"bn4": bn4, "bn5": bn5, "class_scores": fc6}


# ------------------------------------------------------------------ main

if __name__ == "__main__":
    key = jax.random.PRNGKey(0)
    k_x, k_p = jax.random.split(key)

    # Conv2d(192, 256, 3) forces Cin=192; spatial 6x6 -> 4x4 conv out, flat=4096.
    N, CIN, H, W = 2, 192, 6, 6
    NUM_HIDDEN, NUM_CLASSES = 128, 10
    OH, OW = H - 2, W - 2

    x = jax.random.normal(k_x, (N, CIN, H, W), jnp.float32)
    params = init_params(k_p, in_ch=CIN, conv_out_ch=256, conv_spatial_out=OH,
                         num_hidden=NUM_HIDDEN, num_classes=NUM_CLASSES)

    prepped = prepare_params(params, oh=OH, ow=OW)          # one-time prep
    out = model_forward(x, prepped, num_classes=NUM_CLASSES)
    scores = jax.block_until_ready(out["class_scores"])

    ref = model_forward_ref(x, params)
    assert scores.shape == (N, NUM_CLASSES)
    # bf16 MXU operands with f32 accumulation -> slightly relaxed tolerance.
    assert jnp.allclose(out["bn4"], ref["bn4"], rtol=2e-2, atol=2e-2), "bn4 mismatch"
    assert jnp.allclose(out["bn5"], ref["bn5"], rtol=2e-2, atol=2e-2), "bn5 mismatch"
    assert jnp.allclose(scores, ref["class_scores"], rtol=2e-2, atol=2e-2), \
        "class_scores mismatch vs JAX reference"

    print("KERNEL_OK")
</pallas_src>

<mosaic_0001>
module attributes {stable_mosaic.version = 11 : i64} {
  func.func @_fused_forward_kernel(%arg0: memref<32x1792xbf16, #tpu.memory_space<vmem>>, %arg1: memref<1792x256xbf16, #tpu.memory_space<vmem>>, %arg2: memref<1x256xf32, #tpu.memory_space<vmem>>, %arg3: memref<1x256xf32, #tpu.memory_space<vmem>>, %arg4: memref<1x256xf32, #tpu.memory_space<vmem>>, %arg5: memref<16x256x128xbf16, #tpu.memory_space<vmem>>, %arg6: memref<1x128xf32, #tpu.memory_space<vmem>>, %arg7: memref<1x128xf32, #tpu.memory_space<vmem>>, %arg8: memref<1x128xf32, #tpu.memory_space<vmem>>, %arg9: memref<128x128xbf16, #tpu.memory_space<vmem>>, %arg10: memref<1x128xf32, #tpu.memory_space<vmem>>, %arg11: memref<32x256xf32, #tpu.memory_space<vmem>>, %arg12: memref<2x128xf32, #tpu.memory_space<vmem>>, %arg13: memref<2x128xf32, #tpu.memory_space<vmem>>) attributes {dimension_semantics = [], scalar_prefetch = 0 : i64, scratch_operands = 0 : i64, tpu.core_type = #tpu.core_type<tc>} {
    %c0 = arith.constant 0 : index
    %c0_0 = arith.constant 0 : index
    %0 = vector.load %arg0[%c0, %c0_0] : memref<32x1792xbf16, #tpu.memory_space<vmem>>, vector<32x1792xbf16>
    %c0_1 = arith.constant 0 : index
    %c0_2 = arith.constant 0 : index
    %1 = vector.load %arg1[%c0_1, %c0_2] : memref<1792x256xbf16, #tpu.memory_space<vmem>>, vector<1792x256xbf16>
    %cst = arith.constant dense<0.000000e+00> : vector<32x256xf32>
    %2 = tpu.matmul %0, %1, %cst {dimension_numbers = #tpu.dot_dimension_numbers<[1], [0], [0], [1], [0, 0, 1, 1], [], []>} : vector<32x1792xbf16>, vector<1792x256xbf16>, vector<32x256xf32> -> vector<32x256xf32>
    %c0_3 = arith.constant 0 : index
    %c0_4 = arith.constant 0 : index
    %3 = vector.load %arg2[%c0_3, %c0_4] : memref<1x256xf32, #tpu.memory_space<vmem>>, vector<1x256xf32>
    %4 = vector.broadcast %3 : vector<1x256xf32> to vector<32x256xf32>
    %5 = arith.addf %2, %4 : vector<32x256xf32>
    %cst_5 = arith.constant 0.000000e+00 : f32
    %6 = vector.broadcast %cst_5 : f32 to vector<32x256xf32>
    %7 = arith.maximumf %5, %6 : vector<32x256xf32>
    %c0_6 = arith.constant 0 : index
    %c0_7 = arith.constant 0 : index
    %8 = vector.load %arg3[%c0_6, %c0_7] : memref<1x256xf32, #tpu.memory_space<vmem>>, vector<1x256xf32>
    %9 = vector.broadcast %8 : vector<1x256xf32> to vector<32x256xf32>
    %10 = arith.mulf %7, %9 : vector<32x256xf32>
    %c0_8 = arith.constant 0 : index
    %c0_9 = arith.constant 0 : index
    %11 = vector.load %arg4[%c0_8, %c0_9] : memref<1x256xf32, #tpu.memory_space<vmem>>, vector<1x256xf32>
    %12 = vector.broadcast %11 : vector<1x256xf32> to vector<32x256xf32>
    %13 = arith.addf %10, %12 : vector<32x256xf32>
    %c0_10 = arith.constant 0 : index
    %c0_11 = arith.constant 0 : index
    %14 = vector.load %arg11[%c0_10, %c0_11] : memref<32x256xf32, #tpu.memory_space<vmem>>, vector<32x256xf32>
    tpu.vector_store %arg11[%c0_10, %c0_11], %13 {strides = array<i32>} : memref<32x256xf32, #tpu.memory_space<vmem>>, vector<32x256xf32>,
    %15 = arith.truncf %13 : vector<32x256xf32> to vector<32x256xbf16>
    %cst_12 = arith.constant 0.000000e+00 : f32
    %16 = vector.broadcast %cst_12 : f32 to vector<2x128xf32>
    %17 = vector.extract_strided_slice %15 {offsets = [0, 0], sizes = [2, 256], strides = [1, 1]} : vector<32x256xbf16> to vector<2x256xbf16>
    %c0_13 = arith.constant 0 : index
    %c0_14 = arith.constant 0 : index
    %c0_15 = arith.constant 0 : index
    %18 = vector.load %arg5[%c0_13, %c0_14, %c0_15] : memref<16x256x128xbf16, #tpu.memory_space<vmem>>, vector<1x256x128xbf16>
    %19 = vector.shape_cast %18 : vector<1x256x128xbf16> to vector<256x128xbf16>
    %cst_16 = arith.constant dense<0.000000e+00> : vector<2x128xf32>
    %20 = tpu.matmul %17, %19, %cst_16 {dimension_numbers = #tpu.dot_dimension_numbers<[1], [0], [0], [1], [0, 0, 1, 1], [], []>} : vector<2x256xbf16>, vector<256x128xbf16>, vector<2x128xf32> -> vector<2x128xf32>
    %21 = arith.addf %16, %20 : vector<2x128xf32>
    %22 = vector.extract_strided_slice %15 {offsets = [2, 0], sizes = [2, 256], strides = [1, 1]} : vector<32x256xbf16> to vector<2x256xbf16>
    %c1 = arith.constant 1 : index
    %c0_17 = arith.constant 0 : index
    %c0_18 = arith.constant 0 : index
    %23 = vector.load %arg5[%c1, %c0_17, %c0_18] : memref<16x256x128xbf16, #tpu.memory_space<vmem>>, vector<1x256x128xbf16>
    %24 = vector.shape_cast %23 : vector<1x256x128xbf16> to vector<256x128xbf16>
    %cst_19 = arith.constant dense<0.000000e+00> : vector<2x128xf32>
    %25 = tpu.matmul %22, %24, %cst_19 {dimension_numbers = #tpu.dot_dimension_numbers<[1], [0], [0], [1], [0, 0, 1, 1], [], []>} : vector<2x256xbf16>, vector<256x128xbf16>, vector<2x128xf32> -> vector<2x128xf32>
    %26 = arith.addf %21, %25 : vector<2x128xf32>
    %27 = vector.extract_strided_slice %15 {offsets = [4, 0], sizes = [2, 256], strides = [1, 1]} : vector<32x256xbf16> to vector<2x256xbf16>
    %c2 = arith.constant 2 : index
    %c0_20 = arith.constant 0 : index
    %c0_21 = arith.constant 0 : index
    %28 = vector.load %arg5[%c2, %c0_20, %c0_21] : memref<16x256x128xbf16, #tpu.memory_space<vmem>>, vector<1x256x128xbf16>
    %29 = vector.shape_cast %28 : vector<1x256x128xbf16> to vector<256x128xbf16>
    %cst_22 = arith.constant dense<0.000000e+00> : vector<2x128xf32>
    %30 = tpu.matmul %27, %29, %cst_22 {dimension_numbers = #tpu.dot_dimension_numbers<[1], [0], [0], [1], [0, 0, 1, 1], [], []>} : vector<2x256xbf16>, vector<256x128xbf16>, vector<2x128xf32> -> vector<2x128xf32>
    %31 = arith.addf %26, %30 : vector<2x128xf32>
    %32 = vector.extract_strided_slice %15 {offsets = [6, 0], sizes = [2, 256], strides = [1, 1]} : vector<32x256xbf16> to vector<2x256xbf16>
    %c3 = arith.constant 3 : index
    %c0_23 = arith.constant 0 : index
    %c0_24 = arith.constant 0 : index
    %33 = vector.load %arg5[%c3, %c0_23, %c0_24] : memref<16x256x128xbf16, #tpu.memory_space<vmem>>, vector<1x256x128xbf16>
    %34 = vector.shape_cast %33 : vector<1x256x128xbf16> to vector<256x128xbf16>
    %cst_25 = arith.constant dense<0.000000e+00> : vector<2x128xf32>
    %35 = tpu.matmul %32, %34, %cst_25 {dimension_numbers = #tpu.dot_dimension_numbers<[1], [0], [0], [1], [0, 0, 1, 1], [], []>} : vector<2x256xbf16>, vector<256x128xbf16>, vector<2x128xf32> -> vector<2x128xf32>
    %36 = arith.addf %31, %35 : vector<2x128xf32>
    %37 = vector.extract_strided_slice %15 {offsets = [8, 0], sizes = [2, 256], strides = [1, 1]} : vector<32x256xbf16> to vector<2x256xbf16>
    %c4 = arith.constant 4 : index
    %c0_26 = arith.constant 0 : index
    %c0_27 = arith.constant 0 : index
    %38 = vector.load %arg5[%c4, %c0_26, %c0_27] : memref<16x256x128xbf16, #tpu.memory_space<vmem>>, vector<1x256x128xbf16>
    %39 = vector.shape_cast %38 : vector<1x256x128xbf16> to vector<256x128xbf16>
    %cst_28 = arith.constant dense<0.000000e+00> : vector<2x128xf32>
    %40 = tpu.matmul %37, %39, %cst_28 {dimension_numbers = #tpu.dot_dimension_numbers<[1], [0], [0], [1], [0, 0, 1, 1], [], []>} : vector<2x256xbf16>, vector<256x128xbf16>, vector<2x128xf32> -> vector<2x128xf32>
    %41 = arith.addf %36, %40 : vector<2x128xf32>
    %42 = vector.extract_strided_slice %15 {offsets = [10, 0], sizes = [2, 256], strides = [1, 1]} : vector<32x256xbf16> to vector<2x256xbf16>
    %c5 = arith.constant 5 : index
    %c0_29 = arith.constant 0 : index
    %c0_30 = arith.constant 0 : index
    %43 = vector.load %arg5[%c5, %c0_29, %c0_30] : memref<16x256x128xbf16, #tpu.memory_space<vmem>>, vector<1x256x128xbf16>
    %44 = vector.shape_cast %43 : vector<1x256x128xbf16> to vector<256x128xbf16>
    %cst_31 = arith.constant dense<0.000000e+00> : vector<2x128xf32>
    %45 = tpu.matmul %42, %44, %cst_31 {dimension_numbers = #tpu.dot_dimension_numbers<[1], [0], [0], [1], [0, 0, 1, 1], [], []>} : vector<2x256xbf16>, vector<256x128xbf16>, vector<2x128xf32> -> vector<2x128xf32>
    %46 = arith.addf %41, %45 : vector<2x128xf32>
    %47 = vector.extract_strided_slice %15 {offsets = [12, 0], sizes = [2, 256], strides = [1, 1]} : vector<32x256xbf16> to vector<2x256xbf16>
    %c6 = arith.constant 6 : index
    %c0_32 = arith.constant 0 : index
    %c0_33 = arith.constant 0 : index
    %48 = vector.load %arg5[%c6, %c0_32, %c0_33] : memref<16x256x128xbf16, #tpu.memory_space<vmem>>, vector<1x256x128xbf16>
    %49 = vector.shape_cast %48 : vector<1x256x128xbf16> to vector<256x128xbf16>
    %cst_34 = arith.constant dense<0.000000e+00> : vector<2x128xf32>
    %50 = tpu.matmul %47, %49, %cst_34 {dimension_numbers = #tpu.dot_dimension_numbers<[1], [0], [0], [1], [0, 0, 1, 1], [], []>} : vector<2x256xbf16>, vector<256x128xbf16>, vector<2x128xf32> -> vector<2x128xf32>
    %51 = arith.addf %46, %50 : vector<2x128xf32>
    %52 = vector.extract_strided_slice %15 {offsets = [14, 0], sizes = [2, 256], strides = [1, 1]} : vector<32x256xbf16> to vector<2x256xbf16>
    %c7 = arith.constant 7 : index
    %c0_35 = arith.constant 0 : index
    %c0_36 = arith.constant 0 : index
    %53 = vector.load %arg5[%c7, %c0_35, %c0_36] : memref<16x256x128xbf16, #tpu.memory_space<vmem>>, vector<1x256x128xbf16>
    %54 = vector.shape_cast %53 : vector<1x256x128xbf16> to vector<256x128xbf16>
    %cst_37 = arith.constant dense<0.000000e+00> : vector<2x128xf32>
    %55 = tpu.matmul %52, %54, %cst_37 {dimension_numbers = #tpu.dot_dimension_numbers<[1], [0], [0], [1], [0, 0, 1, 1], [], []>} : vector<2x256xbf16>, vector<256x128xbf16>, vector<2x128xf32> -> vector<2x128xf32>
    %56 = arith.addf %51, %55 : vector<2x128xf32>
    %57 = vector.extract_strided_slice %15 {offsets = [16, 0], sizes = [2, 256], strides = [1, 1]} : vector<32x256xbf16> to vector<2x256xbf16>
    %c8 = arith.constant 8 : index
    %c0_38 = arith.constant 0 : index
    %c0_39 = arith.constant 0 : index
    %58 = vector.load %arg5[%c8, %c0_38, %c0_39] : memref<16x256x128xbf16, #tpu.memory_space<vmem>>, vector<1x256x128xbf16>
    %59 = vector.shape_cast %58 : vector<1x256x128xbf16> to vector<256x128xbf16>
    %cst_40 = arith.constant dense<0.000000e+00> : vector<2x128xf32>
    %60 = tpu.matmul %57, %59, %cst_40 {dimension_numbers = #tpu.dot_dimension_numbers<[1], [0], [0], [1], [0, 0, 1, 1], [], []>} : vector<2x256xbf16>, vector<256x128xbf16>, vector<2x128xf32> -> vector<2x128xf32>
    %61 = arith.addf %56, %60 : vector<2x128xf32>
    %62 = vector.extract_strided_slice %15 {offsets = [18, 0], sizes = [2, 256], strides = [1, 1]} : vector<32x256xbf16> to vector<2x256xbf16>
    %c9 = arith.constant 9 : index
    %c0_41 = arith.constant 0 : index
    %c0_42 = arith.constant 0 : index
    %63 = vector.load %arg5[%c9, %c0_41, %c0_42] : memref<16x256x128xbf16, #tpu.memory_space<vmem>>, vector<1x256x128xbf16>
    %64 = vector.shape_cast %63 : vector<1x256x128xbf16> to vector<256x128xbf16>
    %cst_43 = arith.constant dense<0.000000e+00> : vector<2x128xf32>
    %65 = tpu.matmul %62, %64, %cst_43 {dimension_numbers = #tpu.dot_dimension_numbers<[1], [0], [0], [1], [0, 0, 1, 1], [], []>} : vector<2x256xbf16>, vector<256x128xbf16>, vector<2x128xf32> -> vector<2x128xf32>
    %66 = arith.addf %61, %65 : vector<2x128xf32>
    %67 = vector.extract_strided_slice %15 {offsets = [20, 0], sizes = [2, 256], strides = [1, 1]} : vector<32x256xbf16> to vector<2x256xbf16>
    %c10 = arith.constant 10 : index
    %c0_44 = arith.constant 0 : index
    %c0_45 = arith.constant 0 : index
    %68 = vector.load %arg5[%c10, %c0_44, %c0_45] : memref<16x256x128xbf16, #tpu.memory_space<vmem>>, vector<1x256x128xbf16>
    %69 = vector.shape_cast %68 : vector<1x256x128xbf16> to vector<256x128xbf16>
    %cst_46 = arith.constant dense<0.000000e+00> : vector<2x128xf32>
    %70 = tpu.matmul %67, %69, %cst_46 {dimension_numbers = #tpu.dot_dimension_numbers<[1], [0], [0], [1], [0, 0, 1, 1], [], []>} : vector<2x256xbf16>, vector<256x128xbf16>, vector<2x128xf32> -> vector<2x128xf32>
    %71 = arith.addf %66, %70 : vector<2x128xf32>
    %72 = vector.extract_strided_slice %15 {offsets = [22, 0], sizes = [2, 256], strides = [1, 1]} : vector<32x256xbf16> to vector<2x256xbf16>
    %c11 = arith.constant 11 : index
    %c0_47 = arith.constant 0 : index
    %c0_48 = arith.constant 0 : index
    %73 = vector.load %arg5[%c11, %c0_47, %c0_48] : memref<16x256x128xbf16, #tpu.memory_space<vmem>>, vector<1x256x128xbf16>
    %74 = vector.shape_cast %73 : vector<1x256x128xbf16> to vector<256x128xbf16>
    %cst_49 = arith.constant dense<0.000000e+00> : vector<2x128xf32>
    %75 = tpu.matmul %72, %74, %cst_49 {dimension_numbers = #tpu.dot_dimension_numbers<[1], [0], [0], [1], [0, 0, 1, 1], [], []>} : vector<2x256xbf16>, vector<256x128xbf16>, vector<2x128xf32> -> vector<2x128xf32>
    %76 = arith.addf %71, %75 : vector<2x128xf32>
    %77 = vector.extract_strided_slice %15 {offsets = [24, 0], sizes = [2, 256], strides = [1, 1]} : vector<32x256xbf16> to vector<2x256xbf16>
    %c12 = arith.constant 12 : index
    %c0_50 = arith.constant 0 : index
    %c0_51 = arith.constant 0 : index
    %78 = vector.load %arg5[%c12, %c0_50, %c0_51] : memref<16x256x128xbf16, #tpu.memory_space<vmem>>, vector<1x256x128xbf16>
    %79 = vector.shape_cast %78 : vector<1x256x128xbf16> to vector<256x128xbf16>
    %cst_52 = arith.constant dense<0.000000e+00> : vector<2x128xf32>
    %80 = tpu.matmul %77, %79, %cst_52 {dimension_numbers = #tpu.dot_dimension_numbers<[1], [0], [0], [1], [0, 0, 1, 1], [], []>} : vector<2x256xbf16>, vector<256x128xbf16>, vector<2x128xf32> -> vector<2x128xf32>
    %81 = arith.addf %76, %80 : vector<2x128xf32>
    %82 = vector.extract_strided_slice %15 {offsets = [26, 0], sizes = [2, 256], strides = [1, 1]} : vector<32x256xbf16> to vector<2x256xbf16>
    %c13 = arith.constant 13 : index
    %c0_53 = arith.constant 0 : index
    %c0_54 = arith.constant 0 : index
    %83 = vector.load %arg5[%c13, %c0_53, %c0_54] : memref<16x256x128xbf16, #tpu.memory_space<vmem>>, vector<1x256x128xbf16>
    %84 = vector.shape_cast %83 : vector<1x256x128xbf16> to vector<256x128xbf16>
    %cst_55 = arith.constant dense<0.000000e+00> : vector<2x128xf32>
    %85 = tpu.matmul %82, %84, %cst_55 {dimension_numbers = #tpu.dot_dimension_numbers<[1], [0], [0], [1], [0, 0, 1, 1], [], []>} : vector<2x256xbf16>, vector<256x128xbf16>, vector<2x128xf32> -> vector<2x128xf32>
    %86 = arith.addf %81, %85 : vector<2x128xf32>
    %87 = vector.extract_strided_slice %15 {offsets = [28, 0], sizes = [2, 256], strides = [1, 1]} : vector<32x256xbf16> to vector<2x256xbf16>
    %c14 = arith.constant 14 : index
    %c0_56 = arith.constant 0 : index
    %c0_57 = arith.constant 0 : index
    %88 = vector.load %arg5[%c14, %c0_56, %c0_57] : memref<16x256x128xbf16, #tpu.memory_space<vmem>>, vector<1x256x128xbf16>
    %89 = vector.shape_cast %88 : vector<1x256x128xbf16> to vector<256x128xbf16>
    %cst_58 = arith.constant dense<0.000000e+00> : vector<2x128xf32>
    %90 = tpu.matmul %87, %89, %cst_58 {dimension_numbers = #tpu.dot_dimension_numbers<[1], [0], [0], [1], [0, 0, 1, 1], [], []>} : vector<2x256xbf16>, vector<256x128xbf16>, vector<2x128xf32> -> vector<2x128xf32>
    %91 = arith.addf %86, %90 : vector<2x128xf32>
    %92 = vector.extract_strided_slice %15 {offsets = [30, 0], sizes = [2, 256], strides = [1, 1]} : vector<32x256xbf16> to vector<2x256xbf16>
    %c15 = arith.constant 15 : index
    %c0_59 = arith.constant 0 : index
    %c0_60 = arith.constant 0 : index
    %93 = vector.load %arg5[%c15, %c0_59, %c0_60] : memref<16x256x128xbf16, #tpu.memory_space<vmem>>, vector<1x256x128xbf16>
    %94 = vector.shape_cast %93 : vector<1x256x128xbf16> to vector<256x128xbf16>
    %cst_61 = arith.constant dense<0.000000e+00> : vector<2x128xf32>
    %95 = tpu.matmul %92, %94, %cst_61 {dimension_numbers = #tpu.dot_dimension_numbers<[1], [0], [0], [1], [0, 0, 1, 1], [], []>} : vector<2x256xbf16>, vector<256x128xbf16>, vector<2x128xf32> -> vector<2x128xf32>
    %96 = arith.addf %91, %95 : vector<2x128xf32>
    %c0_62 = arith.constant 0 : index
    %c0_63 = arith.constant 0 : index
    %97 = vector.load %arg6[%c0_62, %c0_63] : memref<1x128xf32, #tpu.memory_space<vmem>>, vector<1x128xf32>
    %98 = vector.broadcast %97 : vector<1x128xf32> to vector<2x128xf32>
    %99 = arith.addf %96, %98 : vector<2x128xf32>
    %cst_64 = arith.constant 0.000000e+00 : f32
    %100 = vector.broadcast %cst_64 : f32 to vector<2x128xf32>
    %101 = arith.maximumf %99, %100 : vector<2x128xf32>
    %c0_65 = arith.constant 0 : index
    %c0_66 = arith.constant 0 : index
    %102 = vector.load %arg7[%c0_65, %c0_66] : memref<1x128xf32, #tpu.memory_space<vmem>>, vector<1x128xf32>
    %103 = vector.broadcast %102 : vector<1x128xf32> to vector<2x128xf32>
    %104 = arith.mulf %101, %103 : vector<2x128xf32>
    %c0_67 = arith.constant 0 : index
    %c0_68 = arith.constant 0 : index
    %105 = vector.load %arg8[%c0_67, %c0_68] : memref<1x128xf32, #tpu.memory_space<vmem>>, vector<1x128xf32>
    %106 = vector.broadcast %105 : vector<1x128xf32> to vector<2x128xf32>
    %107 = arith.addf %104, %106 : vector<2x128xf32>
    %c0_69 = arith.constant 0 : index
    %c0_70 = arith.constant 0 : index
    %108 = vector.load %arg12[%c0_69, %c0_70] : memref<2x128xf32, #tpu.memory_space<vmem>>, vector<2x128xf32>
    tpu.vector_store %arg12[%c0_69, %c0_70], %107 {strides = array<i32>} : memref<2x128xf32, #tpu.memory_space<vmem>>, vector<2x128xf32>,
    %109 = arith.truncf %107 : vector<2x128xf32> to vector<2x128xbf16>
    %c0_71 = arith.constant 0 : index
    %c0_72 = arith.constant 0 : index
    %110 = vector.load %arg9[%c0_71, %c0_72] : memref<128x128xbf16, #tpu.memory_space<vmem>>, vector<128x128xbf16>
    %cst_73 = arith.constant dense<0.000000e+00> : vector<2x128xf32>
    %111 = tpu.matmul %109, %110, %cst_73 {dimension_numbers = #tpu.dot_dimension_numbers<[1], [0], [0], [1], [0, 0, 1, 1], [], []>} : vector<2x128xbf16>, vector<128x128xbf16>, vector<2x128xf32> -> vector<2x128xf32>
    %c0_74 = arith.constant 0 : index
    %c0_75 = arith.constant 0 : index
    %112 = vector.load %arg10[%c0_74, %c0_75] : memref<1x128xf32, #tpu.memory_space<vmem>>, vector<1x128xf32>
    %113 = vector.broadcast %112 : vector<1x128xf32> to vector<2x128xf32>
    %114 = arith.addf %111, %113 : vector<2x128xf32>
    %c0_76 = arith.constant 0 : index
    %c0_77 = arith.constant 0 : index
    %115 = vector.load %arg13[%c0_76, %c0_77] : memref<2x128xf32, #tpu.memory_space<vmem>>, vector<2x128xf32>
    tpu.vector_store %arg13[%c0_76, %c0_77], %114 {strides = array<i32>} : memref<2x128xf32, #tpu.memory_space<vmem>>, vector<2x128xf32>,
    return
  }
}

</mosaic_0001>

<bundles_post_ra>
// kernel: model_forward.1
= control target key start
LH: loop header
LB: loop body
LE: loop exit
PB: predicated region body
PF: predicated region fallthrough
CT: control target
= control target key end

     0   :  { %19 = vsyncpa [#allocation3], 0  ;;  %s8151_s0 = inlined_call_operand.vmem [shape: bf16[32,1792], index: 0, kind: input, shape index: {}]   ;;  %s8152_s1 = inlined_call_operand.hbm [shape: bf16[1792,256], index: 1, kind: input, shape index: {}]   ;;  %s8153_s2 = inlined_call_operand.vmem [shape: f32[1,256], index: 2, kind: input, shape index: {}]   ;;  %s8154_s3 = inlined_call_operand.vmem [shape: f32[1,256], index: 3, kind: input, shape index: {}]   ;;  %s8155_s4 = inlined_call_operand.vmem [shape: f32[1,256], index: 4, kind: input, shape index: {}]   ;;  %s8156_s5 = inlined_call_operand.vmem [shape: bf16[16,256,128], index: 5, kind: input, shape index: {}]   ;;  %s8157_s6 = inlined_call_operand.vmem [shape: f32[1,128], index: 6, kind: input, shape index: {}]   ;;  %s8158_s7 = inlined_call_operand.vmem [shape: f32[1,128], index: 7, kind: input, shape index: {}]   ;;  %s8159_s8 = inlined_call_operand.vmem [shape: f32[1,128], index: 8, kind: input, shape index: {}]   ;;  %s8160_s9 = inlined_call_operand.vmem [shape: bf16[128,128], index: 9, kind: input, shape index: {}]   ;;  %s8161_s10 = inlined_call_operand.vmem [shape: f32[1,128], index: 10, kind: input, shape index: {}]   ;;  %s8162_s11 = inlined_call_operand.vmem [shape: f32[32,256], index: 11, kind: output, shape index: {0}]   ;;  %s8163_s12 = inlined_call_operand.hbm [shape: f32[2,128], index: 12, kind: output, shape index: {1}]   ;;  %s8164_s13 = inlined_call_operand.vmem [shape: f32[2,128], index: 13, kind: output, shape index: {2}]  }
   0x1   :  { %20 = vsyncpa [#allocation4], 0  ;;  %s7084_s25 = smov [#allocation2]   ;;  %s7036_s29 = scalar_lea.hbm %s8152_s1, 28672 }
   0x2   :  { %s28_s26 = sshll.u32 %s7084_s25, 4  ;;  %p7037_p0 = scmp.ne.s32.totalorder %s8152_s1, %s7036_s29  ;;  %s29_s26 = int_to_ptr.vmem [resolvable:$true] %s28_s26 }
   0x3   :  { %p7040_p1 = scmp.lt.u32.totalorder %s7036_s29, %s8152_s1 }
   0x5   :  { %p7042_p2 = pnand %p7040_p1, %p7037_p0 }
   0x7   :  { %7045 = shalt.err (!%p7042_p2)
}
   0x8   :  { %s7046_s17 = scalar_lea.vmem %s29_s26, 28672  ;;  %p7051_p4 = scmp.lt.s32.totalorder %s29_s26, %s29_s26 }
   0x9   :  { %p7047_p3 = scmp.ne.s32.totalorder %s29_s26, %s7046_s17  ;;  %p7052_p5 = scmp.lt.s32.totalorder %s7046_s17, %s7046_s17 }
   0xb   :  { %p7053_p6 = por %p7052_p5, %p7051_p4 }
   0xd   :  { %p7054_p7 = pnand %p7053_p6, %p7047_p3 }
   0xf   :  { %7057 = shalt.err (!%p7054_p7)
}
  0x10   :  { %s7085_s18 = smov 128   ;;  %s7086_s19 = smov 8  }
  0x11   :  { %34 = dma.hbm_to_vmem [thread:$0]  %s8152_s1, 28672, %s29_s26, [#allocation3], %s7085_s18, %s7085_s18, %s7086_s19  }
  0x12   :  { %7080 = dma.done.wait [#allocation3], 28672  }
  0x13   :  { %7081 = vsyncadd [#allocation3], 4294938624  ;;  %v6394_v0 = vld [vmem:[#allocation2 + $0x4] ss:$8 sps:$4 sm:$0xff]   ;;  %v6396_v1 = vld [vmem:[#allocation2] ss:$8 sps:$4 sm:$0xff]  }
  0x14   :  { %1581 = vmatprep.subr.bf16.mxu0 %v6394_v0  ;;  %v6397_v2 = vld [vmem:[#allocation2 + $0x14] ss:$8 sps:$4 sm:$0xff]   ;;  %v6399_v3 = vld [vmem:[#allocation2 + $0x10] ss:$8 sps:$4 sm:$0xff]   ;;  %v6400_v4 = vld [vmem:[#allocation2 + $0x24] ss:$8 sps:$4 sm:$0xff]  }
  0x15   :  { %1582 = vmatpush1.bf16.msra.mxu0 %v6396_v1  ;;  %v6402_v5 = vld [vmem:[#allocation2 + $0x20] ss:$8 sps:$4 sm:$0xff]   ;;  %v6403_v6 = vld [vmem:[#allocation2 + $0x34] ss:$8 sps:$4 sm:$0xff]   ;;  %v6405_v7 = vld [vmem:[#allocation2 + $0x30] ss:$8 sps:$4 sm:$0xff]  }
  0x16   :  { %1583 = vmatprep.subr.bf16.mxu0 %v6397_v2  ;;  %v6406_v8 = vld [vmem:[#allocation2 + $0x44] ss:$8 sps:$4 sm:$0xff]   ;;  %v6408_v9 = vld [vmem:[#allocation2 + $0x40] ss:$8 sps:$4 sm:$0xff]   ;;  %v6409_v10 = vld [vmem:[#allocation2 + $0x54] ss:$8 sps:$4 sm:$0xff]  }
  0x17   :  { %v6411_v11 = vld [vmem:[#allocation2 + $0x50] ss:$8 sps:$4 sm:$0xff]   ;;  %v6412_v12 = vld [vmem:[#allocation2 + $0x64] ss:$8 sps:$4 sm:$0xff]   ;;  %v6414_v14 = vld [vmem:[#allocation2 + $0x60] ss:$8 sps:$4 sm:$0xff]  }
  0x18   :  { %v6444_v13 = vld [vmem:[%s8151_s0 + $0x4] ss:$56 sps:$4 sm:$0xff]   ;;  %v6417_v16 = vld [vmem:[#allocation2 + $0x70] ss:$8 sps:$4 sm:$0xff]   ;;  %v6420_v18 = vld [vmem:[#allocation2 + $0x80] ss:$8 sps:$4 sm:$0xff]  }
  0x19   :  { %1584 = vmatpush1.bf16.msra.mxu0 %v6399_v3  ;;  %v6415_v15 = vld [vmem:[#allocation2 + $0x74] ss:$8 sps:$4 sm:$0xff]   ;;  %1613 = vmatprep.mubr.bf16.mxu0 %v6444_v13  ;;  %v6418_v17 = vld [vmem:[#allocation2 + $0x84] ss:$8 sps:$4 sm:$0xff]   ;;  %v6423_v20 = vld [vmem:[#allocation2 + $0x90] ss:$8 sps:$4 sm:$0xff]  }
  0x1a   :  { %1585 = vmatprep.subr.bf16.mxu0 %v6400_v4  ;;  %v6421_v19 = vld [vmem:[#allocation2 + $0x94] ss:$8 sps:$4 sm:$0xff]   ;;  %v6424_v21 = vld [vmem:[#allocation2 + $0xa4] ss:$8 sps:$4 sm:$0xff]   ;;  %v6426_v22 = vld [vmem:[#allocation2 + $0xa0] ss:$8 sps:$4 sm:$0xff]  }
  0x1b   :  { %v6427_v23 = vld [vmem:[#allocation2 + $0xb4] ss:$8 sps:$4 sm:$0xff]   ;;  %v6429_v24 = vld [vmem:[#allocation2 + $0xb0] ss:$8 sps:$4 sm:$0xff]   ;;  %v6430_v25 = vld [vmem:[#allocation2 + $0xc4] ss:$8 sps:$4 sm:$0xff]  }
  0x1c   :  { %v6432_v26 = vld [vmem:[#allocation2 + $0xc0] ss:$8 sps:$4 sm:$0xff]   ;;  %v6433_v27 = vld [vmem:[#allocation2 + $0xd4] ss:$8 sps:$4 sm:$0xff]   ;;  %v6435_v28 = vld [vmem:[#allocation2 + $0xd0] ss:$8 sps:$4 sm:$0xff]  }
  0x1d   :  { %1586 = vmatpush1.bf16.msra.mxu0 %v6402_v5  ;;  %v6436_v29 = vld [vmem:[#allocation2 + $0xe4] ss:$8 sps:$4 sm:$0xff]   ;;  %v6438_v30 = vld [vmem:[#allocation2 + $0xe0] ss:$8 sps:$4 sm:$0xff]   ;;  %v6439_v31 = vld [vmem:[#allocation2 + $0xf4] ss:$8 sps:$4 sm:$0xff]  }
  0x1e   :  { %1587 = vmatprep.subr.bf16.mxu0 %v6403_v6  ;;  %v6441_v32 = vld [vmem:[#allocation2 + $0xf0] ss:$8 sps:$4 sm:$0xff]   ;;  %v6447_v33 = vld [vmem:[#allocation2 + $0x104] ss:$8 sps:$4 sm:$0xff]   ;;  %v6445_v35 = vld [vmem:[#allocation2 + $0x100] ss:$8 sps:$4 sm:$0xff]  }
  0x1f   :  { %v6442_v34 = vld [vmem:[%s8151_s0] ss:$56 sps:$4 sm:$0xff]   ;;  %v6487_v36 = vld [vmem:[%s8151_s0 + $0x74] ss:$56 sps:$4 sm:$0xff]   ;;  %v6492_v40 = vld [vmem:[%s8151_s0 + $0x70] ss:$56 sps:$4 sm:$0xff]  }
  0x20   :  { %v6450_v37 = vld [vmem:[#allocation2 + $0x114] ss:$8 sps:$4 sm:$0xff]   ;;  %v6448_v38 = vld [vmem:[#allocation2 + $0x110] ss:$8 sps:$4 sm:$0xff]   ;;  %v6453_v39 = vld [vmem:[#allocation2 + $0x124] ss:$8 sps:$4 sm:$0xff]  }
  0x21   :  { %1588 = vmatpush1.bf16.msra.mxu0 %v6405_v7  ;;  %v6451_v41 = vld [vmem:[#allocation2 + $0x120] ss:$8 sps:$4 sm:$0xff]   ;;  %v6498_v42 = vld [vmem:[%s8151_s0 + $0xc] ss:$56 sps:$4 sm:$0xff]   ;;  %v6456_v43 = vld [vmem:[#allocation2 + $0x134] ss:$8 sps:$4 sm:$0xff]  }
  0x22   :  { %1589 = vmatprep.subr.bf16.mxu0 %v6406_v8  ;;  %v6454_v44 = vld [vmem:[#allocation2 + $0x130] ss:$8 sps:$4 sm:$0xff]   ;;  %v6459_v45 = vld [vmem:[#allocation2 + $0x144] ss:$8 sps:$4 sm:$0xff]   ;;  %v6457_v46 = vld [vmem:[#allocation2 + $0x140] ss:$8 sps:$4 sm:$0xff]  }
  0x23   :  { %v6462_v47 = vld [vmem:[#allocation2 + $0x154] ss:$8 sps:$4 sm:$0xff]   ;;  %v6460_v48 = vld [vmem:[#allocation2 + $0x150] ss:$8 sps:$4 sm:$0xff]   ;;  %v6465_v49 = vld [vmem:[#allocation2 + $0x164] ss:$8 sps:$4 sm:$0xff]  }
  0x24   :  { %v6463_v50 = vld [vmem:[#allocation2 + $0x160] ss:$8 sps:$4 sm:$0xff]   ;;  %v6468_v51 = vld [vmem:[#allocation2 + $0x174] ss:$8 sps:$4 sm:$0xff]   ;;  %v6466_v52 = vld [vmem:[#allocation2 + $0x170] ss:$8 sps:$4 sm:$0xff]  }
  0x25   :  { %1590 = vmatpush1.bf16.msra.mxu0 %v6408_v9  ;;  %v6471_v53 = vld [vmem:[#allocation2 + $0x184] ss:$8 sps:$4 sm:$0xff]   ;;  %v6469_v54 = vld [vmem:[#allocation2 + $0x180] ss:$8 sps:$4 sm:$0xff]   ;;  %v6474_v55 = vld [vmem:[#allocation2 + $0x194] ss:$8 sps:$4 sm:$0xff]  }
  0x26   :  { %1591 = vmatprep.subr.bf16.mxu0 %v6409_v10  ;;  %v6472_v56 = vld [vmem:[#allocation2 + $0x190] ss:$8 sps:$4 sm:$0xff]   ;;  %v6477_v57 = vld [vmem:[#allocation2 + $0x1a4] ss:$8 sps:$4 sm:$0xff]   ;;  %v6475_v58 = vld [vmem:[#allocation2 + $0x1a0] ss:$8 sps:$4 sm:$0xff]  }
  0x27   :  { %v6480_v59 = vld [vmem:[#allocation2 + $0x1b4] ss:$8 sps:$4 sm:$0xff]   ;;  %v6478_v60 = vld [vmem:[#allocation2 + $0x1b0] ss:$8 sps:$4 sm:$0xff]   ;;  %v6483_v61 = vld [vmem:[#allocation2 + $0x1c4] ss:$8 sps:$4 sm:$0xff]  }
  0x28   :  { %v6481_v62 = vld [vmem:[#allocation2 + $0x1c0] ss:$8 sps:$4 sm:$0xff]   ;;  %v6486_v63 = vld [vmem:[#allocation2 + $0x1d4] ss:$8 sps:$4 sm:$0xff]   ;;  %v6484_v0 = vld [vmem:[#allocation2 + $0x1d0] ss:$8 sps:$4 sm:$0xff]  }
  0x29   :  { %1592 = vmatpush1.bf16.msra.mxu0 %v6411_v11  ;;  %v6491_v1 = vld [vmem:[#allocation2 + $0x1e4] ss:$8 sps:$4 sm:$0xff]   ;;  %v6489_v2 = vld [vmem:[#allocation2 + $0x1e0] ss:$8 sps:$4 sm:$0xff]   ;;  %v6495_v3 = vld [vmem:[#allocation2 + $0x1f4] ss:$8 sps:$4 sm:$0xff]  }
  0x2a   :  { %1593 = vmatprep.subr.bf16.mxu0 %v6412_v12  ;;  %v6493_v4 = vld [vmem:[#allocation2 + $0x1f0] ss:$8 sps:$4 sm:$0xff]   ;;  %v6501_v5 = vld [vmem:[#allocation2 + $0x204] ss:$8 sps:$4 sm:$0xff]   ;;  %v6496_v6 = vld [vmem:[%s8151_s0 + $0x8] ss:$56 sps:$4 sm:$0xff]  }
  0x2b   :  { %v6499_v7 = vld [vmem:[#allocation2 + $0x200] ss:$8 sps:$4 sm:$0xff]   ;;  %v6541_v8 = vld [vmem:[%s8151_s0 + $0x7c] ss:$56 sps:$4 sm:$0xff]   ;;  %v6502_v10 = vld [vmem:[#allocation2 + $0x210] ss:$8 sps:$4 sm:$0xff]  }
  0x2c   :  { %v6504_v9 = vld [vmem:[#allocation2 + $0x214] ss:$8 sps:$4 sm:$0xff]   ;;  %v6507_v11 = vld [vmem:[#allocation2 + $0x224] ss:$8 sps:$4 sm:$0xff]   ;;  %v6546_v12 = vld [vmem:[%s8151_s0 + $0x78] ss:$56 sps:$4 sm:$0xff]  }
  0x2d   :  { %1594 = vmatpush1.bf16.msra.mxu0 %v6414_v14  ;;  %v6505_v13 = vld [vmem:[#allocation2 + $0x220] ss:$8 sps:$4 sm:$0xff]   ;;  %v6510_v14 = vld [vmem:[#allocation2 + $0x234] ss:$8 sps:$4 sm:$0xff]   ;;  %vm7088_vm0 = vmmov 0  }
  0x2e   :  { %1595 = vmatprep.subr.bf16.mxu0 %v6415_v15  ;;  %v6552_v15 = vld [vmem:[%s8151_s0 + $0x14] ss:$56 sps:$4 sm:$0xff]  }
  0x31   :  { %1596 = vmatpush1.bf16.msra.mxu0 %v6417_v16  ;;  %v6508_v16 = vld [vmem:[#allocation2 + $0x230] ss:$8 sps:$4 sm:$0xff]  }
  0x32   :  { %1597 = vmatprep.subr.bf16.mxu0 %v6418_v17  ;;  %v6513_v17 = vld [vmem:[#allocation2 + $0x244] ss:$8 sps:$4 sm:$0xff]  }
  0x35   :  { %1598 = vmatpush1.bf16.msra.mxu0 %v6420_v18  ;;  %v6511_v18 = vld [vmem:[#allocation2 + $0x240] ss:$8 sps:$4 sm:$0xff]  }
  0x36   :  { %1599 = vmatprep.subr.bf16.mxu0 %v6421_v19  ;;  %v6516_v19 = vld [vmem:[#allocation2 + $0x254] ss:$8 sps:$4 sm:$0xff]  }
  0x39   :  { %1600 = vmatpush1.bf16.msra.mxu0 %v6423_v20  ;;  %v6514_v20 = vld [vmem:[#allocation2 + $0x250] ss:$8 sps:$4 sm:$0xff]  }
  0x3a   :  { %1601 = vmatprep.subr.bf16.mxu0 %v6424_v21  ;;  %v6519_v21 = vld [vmem:[#allocation2 + $0x264] ss:$8 sps:$4 sm:$0xff]  }
  0x3d   :  { %1602 = vmatpush1.bf16.msra.mxu0 %v6426_v22  ;;  %v6517_v22 = vld [vmem:[#allocation2 + $0x260] ss:$8 sps:$4 sm:$0xff]  }
  0x3e   :  { %1603 = vmatprep.subr.bf16.mxu0 %v6427_v23  ;;  %v6522_v23 = vld [vmem:[#allocation2 + $0x274] ss:$8 sps:$4 sm:$0xff]  }
  0x41   :  { %1604 = vmatpush1.bf16.msra.mxu0 %v6429_v24  ;;  %v6520_v24 = vld [vmem:[#allocation2 + $0x270] ss:$8 sps:$4 sm:$0xff]  }
  0x42   :  { %1605 = vmatprep.subr.bf16.mxu0 %v6430_v25  ;;  %v6525_v25 = vld [vmem:[#allocation2 + $0x284] ss:$8 sps:$4 sm:$0xff]  }
  0x45   :  { %1606 = vmatpush1.bf16.msra.mxu0 %v6432_v26  ;;  %v6523_v26 = vld [vmem:[#allocation2 + $0x280] ss:$8 sps:$4 sm:$0xff]  }
  0x46   :  { %1607 = vmatprep.subr.bf16.mxu0 %v6433_v27  ;;  %v6528_v27 = vld [vmem:[#allocation2 + $0x294] ss:$8 sps:$4 sm:$0xff]  }
  0x49   :  { %1608 = vmatpush1.bf16.msra.mxu0 %v6435_v28  ;;  %v6526_v28 = vld [vmem:[#allocation2 + $0x290] ss:$8 sps:$4 sm:$0xff]  }
  0x4a   :  { %1609 = vmatprep.subr.bf16.mxu0 %v6436_v29  ;;  %v6531_v29 = vld [vmem:[#allocation2 + $0x2a4] ss:$8 sps:$4 sm:$0xff]  }
  0x4d   :  { %1610 = vmatpush1.bf16.msra.mxu0 %v6438_v30  ;;  %v6529_v30 = vld [vmem:[#allocation2 + $0x2a0] ss:$8 sps:$4 sm:$0xff]  }
  0x4e   :  { %1611 = vmatprep.subr.bf16.mxu0 %v6439_v31  ;;  %v6534_v31 = vld [vmem:[#allocation2 + $0x2b4] ss:$8 sps:$4 sm:$0xff]  }
  0x51   :  { %1612 = vmatpush1.bf16.msra.mxu0 %v6441_v32  ;;  %v6532_v32 = vld [vmem:[#allocation2 + $0x2b0] ss:$8 sps:$4 sm:$0xff]  }
  0x52   :  { %1634 = vmatprep.subr.bf16.mxu0 %v6447_v33  ;;  %v6537_v33 = vld [vmem:[#allocation2 + $0x2c4] ss:$8 sps:$4 sm:$0xff]  }
  0x54   :  { %1614 = vmatmul.mubr.bf16.vlgmr.msra.gmra.mrb[0].mxu0 %v6442_v34  ;;  %v6535_v34 = vld [vmem:[#allocation2 + $0x2c0] ss:$8 sps:$4 sm:$0xff]  }
  0x55   :  { %1635 = vmatpush1.bf16.msra.mxu0 %v6445_v35  ;;  %1623 = vmatprep.mubr.bf16.mxu0 %v6487_v36  ;;  %v6540_v35 = vld [vmem:[#allocation2 + $0x2d4] ss:$8 sps:$4 sm:$0xff]   ;;  %v6538_v36 = vld [vmem:[#allocation2 + $0x2d0] ss:$8 sps:$4 sm:$0xff]  }
  0x56   :  { %1636 = vmatprep.subr.bf16.mxu0 %v6450_v37  ;;  %v6545_v37 = vld [vmem:[#allocation2 + $0x2e4] ss:$8 sps:$4 sm:$0xff]  }
  0x59   :  { %1637 = vmatpush1.bf16.msra.mxu0 %v6448_v38  ;;  %v6543_v38 = vld [vmem:[#allocation2 + $0x2e0] ss:$8 sps:$4 sm:$0xff]  }
  0x5a   :  { %1638 = vmatprep.subr.bf16.mxu0 %v6453_v39  ;;  %v6549_v39 = vld [vmem:[#allocation2 + $0x2f4] ss:$8 sps:$4 sm:$0xff]  }
  0x5c   :  { %1624 = vmatmul.mubr.bf16.gmra.mrb[4].mxu0 %v6492_v40  ;;  %v6547_v40 = vld [vmem:[#allocation2 + $0x2f0] ss:$8 sps:$4 sm:$0xff]  }
  0x5d   :  { %1639 = vmatpush1.bf16.msra.mxu0 %v6451_v41  ;;  %1666 = vmatprep.mubr.bf16.mxu0 %v6498_v42  ;;  %v6555_v41 = vld [vmem:[#allocation2 + $0x304] ss:$8 sps:$4 sm:$0xff]   ;;  %v6550_v42 = vld [vmem:[%s8151_s0 + $0x10] ss:$56 sps:$4 sm:$0xff]  }
  0x5e   :  { %1640 = vmatprep.subr.bf16.mxu0 %v6456_v43  ;;  %v6553_v43 = vld [vmem:[#allocation2 + $0x300] ss:$8 sps:$4 sm:$0xff]  }
  0x61   :  { %1641 = vmatpush1.bf16.msra.mxu0 %v6454_v44  ;;  %v6595_v44 = vld [vmem:[%s8151_s0 + $0x84] ss:$56 sps:$4 sm:$0xff]  }
  0x62   :  { %1642 = vmatprep.subr.bf16.mxu0 %v6459_v45  ;;  %v6558_v45 = vld [vmem:[#allocation2 + $0x314] ss:$8 sps:$4 sm:$0xff]  }
  0x65   :  { %1643 = vmatpush1.bf16.msra.mxu0 %v6457_v46  ;;  %v6556_v46 = vld [vmem:[#allocation2 + $0x310] ss:$8 sps:$4 sm:$0xff]  }
  0x66   :  { %1644 = vmatprep.subr.bf16.mxu0 %v6462_v47  ;;  %v6561_v47 = vld [vmem:[#allocation2 + $0x324] ss:$8 sps:$4 sm:$0xff]  }
  0x69   :  { %1645 = vmatpush1.bf16.msra.mxu0 %v6460_v48  ;;  %v6600_v48 = vld [vmem:[%s8151_s0 + $0x80] ss:$56 sps:$4 sm:$0xff]  }
  0x6a   :  { %1646 = vmatprep.subr.bf16.mxu0 %v6465_v49  ;;  %v6559_v49 = vld [vmem:[#allocation2 + $0x320] ss:$8 sps:$4 sm:$0xff]  }
  0x6d   :  { %1647 = vmatpush1.bf16.msra.mxu0 %v6463_v50  ;;  %v6564_v50 = vld [vmem:[#allocation2 + $0x334] ss:$8 sps:$4 sm:$0xff]  }
  0x6e   :  { %1648 = vmatprep.subr.bf16.mxu0 %v6468_v51  ;;  %v6606_v51 = vld [vmem:[%s8151_s0 + $0x1c] ss:$56 sps:$4 sm:$0xff]  }
  0x71   :  { %1649 = vmatpush1.bf16.msra.mxu0 %v6466_v52  ;;  %v6562_v52 = vld [vmem:[#allocation2 + $0x330] ss:$8 sps:$4 sm:$0xff]  }
  0x72   :  { %1650 = vmatprep.subr.bf16.mxu0 %v6471_v53  ;;  %v6567_v53 = vld [vmem:[#allocation2 + $0x344] ss:$8 sps:$4 sm:$0xff]  }
  0x75   :  { %1651 = vmatpush1.bf16.msra.mxu0 %v6469_v54  ;;  %v6565_v54 = vld [vmem:[#allocation2 + $0x340] ss:$8 sps:$4 sm:$0xff]  }
  0x76   :  { %1652 = vmatprep.subr.bf16.mxu0 %v6474_v55  ;;  %v6570_v55 = vld [vmem:[#allocation2 + $0x354] ss:$8 sps:$4 sm:$0xff]  }
  0x79   :  { %1653 = vmatpush1.bf16.msra.mxu0 %v6472_v56  ;;  %v6568_v56 = vld [vmem:[#allocation2 + $0x350] ss:$8 sps:$4 sm:$0xff]  }
  0x7a   :  { %1654 = vmatprep.subr.bf16.mxu0 %v6477_v57  ;;  %v6573_v57 = vld [vmem:[#allocation2 + $0x364] ss:$8 sps:$4 sm:$0xff]  }
  0x7d   :  { %1655 = vmatpush1.bf16.msra.mxu0 %v6475_v58  ;;  %v6571_v58 = vld [vmem:[#allocation2 + $0x360] ss:$8 sps:$4 sm:$0xff]  }
  0x7e   :  { %1656 = vmatprep.subr.bf16.mxu0 %v6480_v59  ;;  %v6576_v59 = vld [vmem:[#allocation2 + $0x374] ss:$8 sps:$4 sm:$0xff]  }
  0x81   :  { %1657 = vmatpush1.bf16.msra.mxu0 %v6478_v60  ;;  %v6574_v60 = vld [vmem:[#allocation2 + $0x370] ss:$8 sps:$4 sm:$0xff]  }
  0x82   :  { %1658 = vmatprep.subr.bf16.mxu0 %v6483_v61  ;;  %v6579_v61 = vld [vmem:[#allocation2 + $0x384] ss:$8 sps:$4 sm:$0xff]  }
  0x85   :  { %1659 = vmatpush1.bf16.msra.mxu0 %v6481_v62  ;;  %v6577_v62 = vld [vmem:[#allocation2 + $0x380] ss:$8 sps:$4 sm:$0xff]  }
  0x86   :  { %1660 = vmatprep.subr.bf16.mxu0 %v6486_v63  ;;  %v6582_v63 = vld [vmem:[#allocation2 + $0x394] ss:$8 sps:$4 sm:$0xff]  }
  0x89   :  { %1661 = vmatpush1.bf16.msra.mxu0 %v6484_v0  ;;  %v6580_v0 = vld [vmem:[#allocation2 + $0x390] ss:$8 sps:$4 sm:$0xff]  }
  0x8a   :  { %1662 = vmatprep.subr.bf16.mxu0 %v6491_v1  ;;  %v6585_v1 = vld [vmem:[#allocation2 + $0x3a4] ss:$8 sps:$4 sm:$0xff]  }
  0x8d   :  { %1663 = vmatpush1.bf16.msra.mxu0 %v6489_v2  ;;  %v6583_v2 = vld [vmem:[#allocation2 + $0x3a0] ss:$8 sps:$4 sm:$0xff]  }
  0x8e   :  { %1664 = vmatprep.subr.bf16.mxu0 %v6495_v3  ;;  %v6588_v3 = vld [vmem:[#allocation2 + $0x3b4] ss:$8 sps:$4 sm:$0xff]  }
  0x91   :  { %1665 = vmatpush1.bf16.msra.mxu0 %v6493_v4  ;;  %v6586_v4 = vld [vmem:[#allocation2 + $0x3b0] ss:$8 sps:$4 sm:$0xff]  }
  0x92   :  { %1687 = vmatprep.subr.bf16.mxu0 %v6501_v5  ;;  %v6591_v5 = vld [vmem:[#allocation2 + $0x3c4] ss:$8 sps:$4 sm:$0xff]  }
  0x94   :  { %1667 = vmatmul.mubr.bf16.vlgmr.msra.gmra.mrb[0].mxu0 %v6496_v6  ;;  %v6589_v6 = vld [vmem:[#allocation2 + $0x3c0] ss:$8 sps:$4 sm:$0xff]  }
  0x95   :  { %1688 = vmatpush1.bf16.msra.mxu0 %v6499_v7  ;;  %1676 = vmatprep.mubr.bf16.mxu0 %v6541_v8  ;;  %v6594_v7 = vld [vmem:[#allocation2 + $0x3d4] ss:$8 sps:$4 sm:$0xff]   ;;  %v6592_v8 = vld [vmem:[#allocation2 + $0x3d0] ss:$8 sps:$4 sm:$0xff]  }
  0x96   :  { %1689 = vmatprep.subr.bf16.mxu0 %v6504_v9  ;;  %v6599_v9 = vld [vmem:[#allocation2 + $0x3e4] ss:$8 sps:$4 sm:$0xff]  }
  0x99   :  { %1690 = vmatpush1.bf16.msra.mxu0 %v6502_v10  ;;  %v6597_v10 = vld [vmem:[#allocation2 + $0x3e0] ss:$8 sps:$4 sm:$0xff]  }
  0x9a   :  { %1691 = vmatprep.subr.bf16.mxu0 %v6507_v11  ;;  %v6603_v11 = vld [vmem:[#allocation2 + $0x3f4] ss:$8 sps:$4 sm:$0xff]  }
  0x9c   :  { %1677 = vmatmul.mubr.bf16.gmra.mrb[4].mxu0 %v6546_v12  ;;  %v6601_v12 = vld [vmem:[#allocation2 + $0x3f0] ss:$8 sps:$4 sm:$0xff]  }
  0x9d   :  { %1692 = vmatpush1.bf16.msra.mxu0 %v6505_v13  ;;  %1719 = vmatprep.mubr.bf16.mxu0 %v6552_v15  ;;  %v6609_v13 = vld [vmem:[#allocation2 + $0x404] ss:$8 sps:$4 sm:$0xff]   ;;  %v6607_v15 = vld [vmem:[#allocation2 + $0x400] ss:$8 sps:$4 sm:$0xff]  }
  0x9e   :  { %1693 = vmatprep.subr.bf16.mxu0 %v6510_v14  ;;  %v6604_v14 = vld [vmem:[%s8151_s0 + $0x18] ss:$56 sps:$4 sm:$0xff]  }
  0xa1   :  { %1694 = vmatpush1.bf16.msra.mxu0 %v6508_v16  ;;  %v6649_v16 = vld [vmem:[%s8151_s0 + $0x8c] ss:$56 sps:$4 sm:$0xff]  }
  0xa2   :  { %1695 = vmatprep.subr.bf16.mxu0 %v6513_v17  ;;  %v6612_v17 = vld [vmem:[#allocation2 + $0x414] ss:$8 sps:$4 sm:$0xff]  }
  0xa5   :  { %1696 = vmatpush1.bf16.msra.mxu0 %v6511_v18  ;;  %v6610_v18 = vld [vmem:[#allocation2 + $0x410] ss:$8 sps:$4 sm:$0xff]  }
  0xa6   :  { %1697 = vmatprep.subr.bf16.mxu0 %v6516_v19  ;;  %v6615_v19 = vld [vmem:[#allocation2 + $0x424] ss:$8 sps:$4 sm:$0xff]  }
  0xa9   :  { %1698 = vmatpush1.bf16.msra.mxu0 %v6514_v20  ;;  %v6654_v20 = vld [vmem:[%s8151_s0 + $0x88] ss:$56 sps:$4 sm:$0xff]  }
  0xaa   :  { %1699 = vmatprep.subr.bf16.mxu0 %v6519_v21  ;;  %v6613_v21 = vld [vmem:[#allocation2 + $0x420] ss:$8 sps:$4 sm:$0xff]  }
  0xad   :  { %1700 = vmatpush1.bf16.msra.mxu0 %v6517_v22  ;;  %v6618_v22 = vld [vmem:[#allocation2 + $0x434] ss:$8 sps:$4 sm:$0xff]  }
  0xae   :  { %1701 = vmatprep.subr.bf16.mxu0 %v6522_v23  ;;  %v6660_v23 = vld [vmem:[%s8151_s0 + $0x24] ss:$56 sps:$4 sm:$0xff]  }
  0xb1   :  { %1702 = vmatpush1.bf16.msra.mxu0 %v6520_v24  ;;  %v6616_v24 = vld [vmem:[#allocation2 + $0x430] ss:$8 sps:$4 sm:$0xff]  }
  0xb2   :  { %1703 = vmatprep.subr.bf16.mxu0 %v6525_v25  ;;  %v6621_v25 = vld [vmem:[#allocation2 + $0x444] ss:$8 sps:$4 sm:$0xff]  }
  0xb5   :  { %1704 = vmatpush1.bf16.msra.mxu0 %v6523_v26  ;;  %v6619_v26 = vld [vmem:[#allocation2 + $0x440] ss:$8 sps:$4 sm:$0xff]  }
  0xb6   :  { %1705 = vmatprep.subr.bf16.mxu0 %v6528_v27  ;;  %v6624_v27 = vld [vmem:[#allocation2 + $0x454] ss:$8 sps:$4 sm:$0xff]  }
  0xb9   :  { %1706 = vmatpush1.bf16.msra.mxu0 %v6526_v28  ;;  %v6622_v28 = vld [vmem:[#allocation2 + $0x450] ss:$8 sps:$4 sm:$0xff]  }
  0xba   :  { %1707 = vmatprep.subr.bf16.mxu0 %v6531_v29  ;;  %v6627_v29 = vld [vmem:[#allocation2 + $0x464] ss:$8 sps:$4 sm:$0xff]  }
  0xbd   :  { %1708 = vmatpush1.bf16.msra.mxu0 %v6529_v30  ;;  %v6625_v30 = vld [vmem:[#allocation2 + $0x460] ss:$8 sps:$4 sm:$0xff]  }
  0xbe   :  { %1709 = vmatprep.subr.bf16.mxu0 %v6534_v31  ;;  %v6630_v31 = vld [vmem:[#allocation2 + $0x474] ss:$8 sps:$4 sm:$0xff]  }
  0xc1   :  { %1710 = vmatpush1.bf16.msra.mxu0 %v6532_v32  ;;  %v6628_v32 = vld [vmem:[#allocation2 + $0x470] ss:$8 sps:$4 sm:$0xff]  }
  0xc2   :  { %1711 = vmatprep.subr.bf16.mxu0 %v6537_v33  ;;  %v6633_v33 = vld [vmem:[#allocation2 + $0x484] ss:$8 sps:$4 sm:$0xff]  }
  0xc5   :  { %1712 = vmatpush1.bf16.msra.mxu0 %v6535_v34  ;;  %v6631_v34 = vld [vmem:[#allocation2 + $0x480] ss:$8 sps:$4 sm:$0xff]  }
  0xc6   :  { %1713 = vmatprep.subr.bf16.mxu0 %v6540_v35  ;;  %v6636_v35 = vld [vmem:[#allocation2 + $0x494] ss:$8 sps:$4 sm:$0xff]  }
  0xc9   :  { %1714 = vmatpush1.bf16.msra.mxu0 %v6538_v36  ;;  %v6634_v36 = vld [vmem:[#allocation2 + $0x490] ss:$8 sps:$4 sm:$0xff]  }
  0xca   :  { %1715 = vmatprep.subr.bf16.mxu0 %v6545_v37  ;;  %v6639_v37 = vld [vmem:[#allocation2 + $0x4a4] ss:$8 sps:$4 sm:$0xff]  }
  0xcd   :  { %1716 = vmatpush1.bf16.msra.mxu0 %v6543_v38  ;;  %v6637_v38 = vld [vmem:[#allocation2 + $0x4a0] ss:$8 sps:$4 sm:$0xff]  }
  0xce   :  { %1717 = vmatprep.subr.bf16.mxu0 %v6549_v39  ;;  %v6642_v39 = vld [vmem:[#allocation2 + $0x4b4] ss:$8 sps:$4 sm:$0xff]  }
  0xd1   :  { %1718 = vmatpush1.bf16.msra.mxu0 %v6547_v40  ;;  %v6640_v40 = vld [vmem:[#allocation2 + $0x4b0] ss:$8 sps:$4 sm:$0xff]  }
  0xd2   :  { %1740 = vmatprep.subr.bf16.mxu0 %v6555_v41  ;;  %v6645_v41 = vld [vmem:[#allocation2 + $0x4c4] ss:$8 sps:$4 sm:$0xff]  }
  0xd4   :  { %1720 = vmatmul.mubr.bf16.vlgmr.msra.gmra.mrb[0].mxu0 %v6550_v42  ;;  %v6643_v42 = vld [vmem:[#allocation2 + $0x4c0] ss:$8 sps:$4 sm:$0xff]  }
  0xd5   :  { %1741 = vmatpush1.bf16.msra.mxu0 %v6553_v43  ;;  %1729 = vmatprep.mubr.bf16.mxu0 %v6595_v44  ;;  %v6648_v43 = vld [vmem:[#allocation2 + $0x4d4] ss:$8 sps:$4 sm:$0xff]   ;;  %v6646_v44 = vld [vmem:[#allocation2 + $0x4d0] ss:$8 sps:$4 sm:$0xff]  }
  0xd6   :  { %1742 = vmatprep.subr.bf16.mxu0 %v6558_v45  ;;  %v6653_v45 = vld [vmem:[#allocation2 + $0x4e4] ss:$8 sps:$4 sm:$0xff]  }
  0xd9   :  { %1743 = vmatpush1.bf16.msra.mxu0 %v6556_v46  ;;  %v6651_v46 = vld [vmem:[#allocation2 + $0x4e0] ss:$8 sps:$4 sm:$0xff]  }
  0xda   :  { %1744 = vmatprep.subr.bf16.mxu0 %v6561_v47  ;;  %v6657_v47 = vld [vmem:[#allocation2 + $0x4f4] ss:$8 sps:$4 sm:$0xff]  }
  0xdc   :  { %1730 = vmatmul.mubr.bf16.gmra.mrb[4].mxu0 %v6600_v48  ;;  %v6655_v48 = vld [vmem:[#allocation2 + $0x4f0] ss:$8 sps:$4 sm:$0xff]  }
  0xdd   :  { %1745 = vmatpush1.bf16.msra.mxu0 %v6559_v49  ;;  %1772 = vmatprep.mubr.bf16.mxu0 %v6606_v51  ;;  %v6663_v49 = vld [vmem:[#allocation2 + $0x504] ss:$8 sps:$4 sm:$0xff]   ;;  %v6661_v51 = vld [vmem:[#allocation2 + $0x500] ss:$8 sps:$4 sm:$0xff]  }
  0xde   :  { %1746 = vmatprep.subr.bf16.mxu0 %v6564_v50  ;;  %v6658_v50 = vld [vmem:[%s8151_s0 + $0x20] ss:$56 sps:$4 sm:$0xff]  }
  0xe1   :  { %1747 = vmatpush1.bf16.msra.mxu0 %v6562_v52  ;;  %v6666_v52 = vld [vmem:[#allocation2 + $0x514] ss:$8 sps:$4 sm:$0xff]  }
  0xe2   :  { %1748 = vmatprep.subr.bf16.mxu0 %v6567_v53  ;;  %v6703_v53 = vld [vmem:[%s8151_s0 + $0x94] ss:$56 sps:$4 sm:$0xff]  }
  0xe5   :  { %1749 = vmatpush1.bf16.msra.mxu0 %v6565_v54  ;;  %v6664_v54 = vld [vmem:[#allocation2 + $0x510] ss:$8 sps:$4 sm:$0xff]  }
  0xe6   :  { %1750 = vmatprep.subr.bf16.mxu0 %v6570_v55  ;;  %v6669_v55 = vld [vmem:[#allocation2 + $0x524] ss:$8 sps:$4 sm:$0xff]  }
  0xe9   :  { %1751 = vmatpush1.bf16.msra.mxu0 %v6568_v56  ;;  %v6708_v56 = vld [vmem:[%s8151_s0 + $0x90] ss:$56 sps:$4 sm:$0xff]  }
  0xea   :  { %1752 = vmatprep.subr.bf16.mxu0 %v6573_v57  ;;  %v6667_v57 = vld [vmem:[#allocation2 + $0x520] ss:$8 sps:$4 sm:$0xff]  }
  0xed   :  { %1753 = vmatpush1.bf16.msra.mxu0 %v6571_v58  ;;  %v6714_v58 = vld [vmem:[%s8151_s0 + $0x2c] ss:$56 sps:$4 sm:$0xff]  }
  0xee   :  { %1754 = vmatprep.subr.bf16.mxu0 %v6576_v59  ;;  %v6672_v59 = vld [vmem:[#allocation2 + $0x534] ss:$8 sps:$4 sm:$0xff]  }
  0xf1   :  { %1755 = vmatpush1.bf16.msra.mxu0 %v6574_v60  ;;  %v6772_v60 = vld [vmem:[%s8156_s5 + $0xc0] sm:$0xff]  }
  0xf2   :  { %1756 = vmatprep.subr.bf16.mxu0 %v6579_v61  ;;  %v6773_v61 = vld [vmem:[%s8156_s5 + $0x80] sm:$0xff]   ;;  %5951 = vmatprep.subr.bf16.mxu1 %v6772_v60  ;;  %v6754_v60 = vld [vmem:[#allocation2 + $0x6d0] ss:$8 sps:$4 sm:$0xff]  }
  0xf3   :  { %5952 = vmatpush3.bf16.msra.mxu1 %v6773_v61  ;;  %v6762_v61 = vld [vmem:[#allocation2 + $0x6e4] ss:$8 sps:$4 sm:$0xff]  }
  0xf5   :  { %1757 = vmatpush1.bf16.msra.mxu0 %v6577_v62  ;;  %v6774_v62 = vld [vmem:[%s8156_s5 + $0xc8] sm:$0xff]  }
  0xf6   :  { %1758 = vmatprep.subr.bf16.mxu0 %v6582_v63  ;;  %v6670_v63 = vld [vmem:[#allocation2 + $0x530] ss:$8 sps:$4 sm:$0xff]   ;;  %5953 = vmatprep.subr.bf16.mxu1 %v6774_v62  ;;  %v6760_v62 = vld [vmem:[#allocation2 + $0x6e0] ss:$8 sps:$4 sm:$0xff]  }
  0xf9   :  { %1759 = vmatpush1.bf16.msra.mxu0 %v6580_v0  ;;  %v6675_v0 = vld [vmem:[#allocation2 + $0x544] ss:$8 sps:$4 sm:$0xff]  }
  0xfa   :  { %1760 = vmatprep.subr.bf16.mxu0 %v6585_v1  ;;  %v6673_v1 = vld [vmem:[#allocation2 + $0x540] ss:$8 sps:$4 sm:$0xff]  }
  0xfd   :  { %1761 = vmatpush1.bf16.msra.mxu0 %v6583_v2  ;;  %v6775_v2 = vld [vmem:[%s8156_s5 + $0x88] sm:$0xff]  }
  0xfe   :  { %1762 = vmatprep.subr.bf16.mxu0 %v6588_v3  ;;  %v6678_v3 = vld [vmem:[#allocation2 + $0x554] ss:$8 sps:$4 sm:$0xff]   ;;  %5954 = vmatpush3.bf16.msra.mxu1 %v6775_v2  ;;  %v6766_v2 = vld [vmem:[%s8151_s0 + $0x30] ss:$56 sps:$4 sm:$0xff]  }
 0x101   :  { %1763 = vmatpush1.bf16.msra.mxu0 %v6586_v4  ;;  %v6776_v4 = vld [vmem:[%s8156_s5 + $0xd0] sm:$0xff]  }
 0x102   :  { %1764 = vmatprep.subr.bf16.mxu0 %v6591_v5  ;;  %v6777_v5 = vld [vmem:[%s8156_s5 + $0x90] sm:$0xff]   ;;  %5955 = vmatprep.subr.bf16.mxu1 %v6776_v4  ;;  %v6779_v4 = vld [vmem:[%s8156_s5 + $0x700] sm:$0xff]  }
 0x103   :  { %5956 = vmatpush3.bf16.msra.mxu1 %v6777_v5  ;;  %v6782_v5 = vld [vmem:[%s8156_s5 + $0x748] sm:$0xff]  }
 0x105   :  { %1765 = vmatpush1.bf16.msra.mxu0 %v6589_v6  ;;  %v6780_v6 = vld [vmem:[%s8156_s5 + $0xd8] sm:$0xff]  }
 0x106   :  { %1766 = vmatprep.subr.bf16.mxu0 %v6594_v7  ;;  %v6676_v7 = vld [vmem:[#allocation2 + $0x550] ss:$8 sps:$4 sm:$0xff]   ;;  %5957 = vmatprep.subr.bf16.mxu1 %v6780_v6  ;;  %v6783_v6 = vld [vmem:[%s8156_s5 + $0x708] sm:$0xff]  }
 0x109   :  { %1767 = vmatpush1.bf16.msra.mxu0 %v6592_v8  ;;  %v6681_v8 = vld [vmem:[#allocation2 + $0x564] ss:$8 sps:$4 sm:$0xff]  }
 0x10a   :  { %1768 = vmatprep.subr.bf16.mxu0 %v6599_v9  ;;  %v6781_v9 = vld [vmem:[%s8156_s5 + $0x98] sm:$0xff]  }
 0x10b   :  { %5958 = vmatpush3.bf16.msra.mxu1 %v6781_v9  ;;  %v6785_v9 = vld [vmem:[%s8156_s5 + $0xa0] sm:$0xff]  }
 0x10d   :  { %1769 = vmatpush1.bf16.msra.mxu0 %v6597_v10  ;;  %v6679_v10 = vld [vmem:[#allocation2 + $0x560] ss:$8 sps:$4 sm:$0xff]  }
 0x10e   :  { %1770 = vmatprep.subr.bf16.mxu0 %v6603_v11  ;;  %v6684_v11 = vld [vmem:[#allocation2 + $0x574] ss:$8 sps:$4 sm:$0xff]  }
 0x111   :  { %1771 = vmatpush1.bf16.msra.mxu0 %v6601_v12  ;;  %v6682_v12 = vld [vmem:[#allocation2 + $0x570] ss:$8 sps:$4 sm:$0xff]  }
 0x112   :  { %1793 = vmatprep.subr.bf16.mxu0 %v6609_v13  ;;  %v6687_v13 = vld [vmem:[#allocation2 + $0x584] ss:$8 sps:$4 sm:$0xff]  }
 0x114   :  { %1773 = vmatmul.mubr.bf16.vlgmr.msra.gmra.mrb[0].mxu0 %v6604_v14  ;;  %v6685_v14 = vld [vmem:[#allocation2 + $0x580] ss:$8 sps:$4 sm:$0xff]  }
 0x115   :  { %1794 = vmatpush1.bf16.msra.mxu0 %v6607_v15  ;;  %1782 = vmatprep.mubr.bf16.mxu0 %v6649_v16  ;;  %v6690_v15 = vld [vmem:[#allocation2 + $0x594] ss:$8 sps:$4 sm:$0xff]   ;;  %v6688_v16 = vld [vmem:[#allocation2 + $0x590] ss:$8 sps:$4 sm:$0xff]  }
 0x116   :  { %1795 = vmatprep.subr.bf16.mxu0 %v6612_v17  ;;  %v6693_v17 = vld [vmem:[#allocation2 + $0x5a4] ss:$8 sps:$4 sm:$0xff]  }
 0x119   :  { %1796 = vmatpush1.bf16.msra.mxu0 %v6610_v18  ;;  %v6691_v18 = vld [vmem:[#allocation2 + $0x5a0] ss:$8 sps:$4 sm:$0xff]  }
 0x11a   :  { %1797 = vmatprep.subr.bf16.mxu0 %v6615_v19  ;;  %v6696_v19 = vld [vmem:[#allocation2 + $0x5b4] ss:$8 sps:$4 sm:$0xff]  }
 0x11c   :  { %1783 = vmatmul.mubr.bf16.gmra.mrb[4].mxu0 %v6654_v20  ;;  %v6694_v20 = vld [vmem:[#allocation2 + $0x5b0] ss:$8 sps:$4 sm:$0xff]  }
 0x11d   :  { %1798 = vmatpush1.bf16.msra.mxu0 %v6613_v21  ;;  %1825 = vmatprep.mubr.bf16.mxu0 %v6660_v23  ;;  %v6699_v21 = vld [vmem:[#allocation2 + $0x5c4] ss:$8 sps:$4 sm:$0xff]   ;;  %v6702_v23 = vld [vmem:[#allocation2 + $0x5d4] ss:$8 sps:$4 sm:$0xff]  }
 0x11e   :  { %1799 = vmatprep.subr.bf16.mxu0 %v6618_v22  ;;  %v6697_v22 = vld [vmem:[#allocation2 + $0x5c0] ss:$8 sps:$4 sm:$0xff]  }
 0x121   :  { %1800 = vmatpush1.bf16.msra.mxu0 %v6616_v24  ;;  %v6700_v24 = vld [vmem:[#allocation2 + $0x5d0] ss:$8 sps:$4 sm:$0xff]  }
 0x122   :  { %1801 = vmatprep.subr.bf16.mxu0 %v6621_v25  ;;  %v6707_v25 = vld [vmem:[#allocation2 + $0x5e4] ss:$8 sps:$4 sm:$0xff]  }
 0x125   :  { %1802 = vmatpush1.bf16.msra.mxu0 %v6619_v26  ;;  %v6705_v26 = vld [vmem:[#allocation2 + $0x5e0] ss:$8 sps:$4 sm:$0xff]  }
 0x126   :  { %1803 = vmatprep.subr.bf16.mxu0 %v6624_v27  ;;  %v6711_v27 = vld [vmem:[#allocation2 + $0x5f4] ss:$8 sps:$4 sm:$0xff]  }
 0x129   :  { %1804 = vmatpush1.bf16.msra.mxu0 %v6622_v28  ;;  %v6709_v28 = vld [vmem:[#allocation2 + $0x5f0] ss:$8 sps:$4 sm:$0xff]  }
 0x12a   :  { %1805 = vmatprep.subr.bf16.mxu0 %v6627_v29  ;;  %v6717_v29 = vld [vmem:[#allocation2 + $0x604] ss:$8 sps:$4 sm:$0xff]  }
 0x12d   :  { %1806 = vmatpush1.bf16.msra.mxu0 %v6625_v30  ;;  %v6712_v30 = vld [vmem:[%s8151_s0 + $0x28] ss:$56 sps:$4 sm:$0xff]  }
 0x12e   :  { %1807 = vmatprep.subr.bf16.mxu0 %v6630_v31  ;;  %v6715_v31 = vld [vmem:[#allocation2 + $0x600] ss:$8 sps:$4 sm:$0xff]  }
 0x131   :  { %1808 = vmatpush1.bf16.msra.mxu0 %v6628_v32  ;;  %v6757_v32 = vld [vmem:[%s8151_s0 + $0x9c] ss:$56 sps:$4 sm:$0xff]  }
 0x132   :  { %1809 = vmatprep.subr.bf16.mxu0 %v6633_v33  ;;  %v6720_v33 = vld [vmem:[#allocation2 + $0x614] ss:$8 sps:$4 sm:$0xff]  }
 0x135   :  { %1810 = vmatpush1.bf16.msra.mxu0 %v6631_v34  ;;  %v6718_v34 = vld [vmem:[#allocation2 + $0x610] ss:$8 sps:$4 sm:$0xff]  }
 0x136   :  { %1811 = vmatprep.subr.bf16.mxu0 %v6636_v35  ;;  %v6723_v35 = vld [vmem:[#allocation2 + $0x624] ss:$8 sps:$4 sm:$0xff]  }
 0x139   :  { %1812 = vmatpush1.bf16.msra.mxu0 %v6634_v36  ;;  %v6759_v36 = vld [vmem:[%s8151_s0 + $0x98] ss:$56 sps:$4 sm:$0xff]  }
 0x13a   :  { %1813 = vmatprep.subr.bf16.mxu0 %v6639_v37  ;;  %v6721_v37 = vld [vmem:[#allocation2 + $0x620] ss:$8 sps:$4 sm:$0xff]  }
 0x13d   :  { %1814 = vmatpush1.bf16.msra.mxu0 %v6637_v38  ;;  %v6768_v38 = vld [vmem:[%s8151_s0 + $0x34] ss:$56 sps:$4 sm:$0xff]  }
 0x13e   :  { %1815 = vmatprep.subr.bf16.mxu0 %v6642_v39  ;;  %v6726_v39 = vld [vmem:[#allocation2 + $0x634] ss:$8 sps:$4 sm:$0xff]  }
 0x141   :  { %1816 = vmatpush1.bf16.msra.mxu0 %v6640_v40  ;;  %v6724_v40 = vld [vmem:[#allocation2 + $0x630] ss:$8 sps:$4 sm:$0xff]  }
 0x142   :  { %1817 = vmatprep.subr.bf16.mxu0 %v6645_v41  ;;  %v6729_v41 = vld [vmem:[#allocation2 + $0x644] ss:$8 sps:$4 sm:$0xff]  }
 0x145   :  { %1818 = vmatpush1.bf16.msra.mxu0 %v6643_v42  ;;  %v6727_v42 = vld [vmem:[#allocation2 + $0x640] ss:$8 sps:$4 sm:$0xff]  }
 0x146   :  { %1819 = vmatprep.subr.bf16.mxu0 %v6648_v43  ;;  %v6732_v43 = vld [vmem:[#allocation2 + $0x654] ss:$8 sps:$4 sm:$0xff]  }
 0x149   :  { %1820 = vmatpush1.bf16.msra.mxu0 %v6646_v44  ;;  %v6730_v44 = vld [vmem:[#allocation2 + $0x650] ss:$8 sps:$4 sm:$0xff]  }
 0x14a   :  { %1821 = vmatprep.subr.bf16.mxu0 %v6653_v45  ;;  %v6735_v45 = vld [vmem:[#allocation2 + $0x664] ss:$8 sps:$4 sm:$0xff]  }
 0x14d   :  { %1822 = vmatpush1.bf16.msra.mxu0 %v6651_v46  ;;  %v6733_v46 = vld [vmem:[#allocation2 + $0x660] ss:$8 sps:$4 sm:$0xff]  }
 0x14e   :  { %1823 = vmatprep.subr.bf16.mxu0 %v6657_v47  ;;  %v6738_v47 = vld [vmem:[#allocation2 + $0x674] ss:$8 sps:$4 sm:$0xff]  }
 0x151   :  { %1824 = vmatpush1.bf16.msra.mxu0 %v6655_v48  ;;  %v6736_v48 = vld [vmem:[#allocation2 + $0x670] ss:$8 sps:$4 sm:$0xff]  }
 0x152   :  { %1846 = vmatprep.subr.bf16.mxu0 %v6663_v49  ;;  %v6741_v49 = vld [vmem:[#allocation2 + $0x684] ss:$8 sps:$4 sm:$0xff]  }
 0x154   :  { %1826 = vmatmul.mubr.bf16.vlgmr.msra.gmra.mrb[0].mxu0 %v6658_v50  ;;  %v6739_v50 = vld [vmem:[#allocation2 + $0x680] ss:$8 sps:$4 sm:$0xff]  }
 0x155   :  { %1847 = vmatpush1.bf16.msra.mxu0 %v6661_v51  ;;  %1835 = vmatprep.mubr.bf16.mxu0 %v6703_v53  ;;  %v6744_v51 = vld [vmem:[#allocation2 + $0x694] ss:$8 sps:$4 sm:$0xff]   ;;  %v6747_v53 = vld [vmem:[#allocation2 + $0x6a4] ss:$8 sps:$4 sm:$0xff]  }
 0x156   :  { %1848 = vmatprep.subr.bf16.mxu0 %v6666_v52  ;;  %v6742_v52 = vld [vmem:[#allocation2 + $0x690] ss:$8 sps:$4 sm:$0xff]  }
 0x159   :  { %1849 = vmatpush1.bf16.msra.mxu0 %v6664_v54  ;;  %v6745_v54 = vld [vmem:[#allocation2 + $0x6a0] ss:$8 sps:$4 sm:$0xff]  }
 0x15a   :  { %1850 = vmatprep.subr.bf16.mxu0 %v6669_v55  ;;  %v6750_v55 = vld [vmem:[#allocation2 + $0x6b4] ss:$8 sps:$4 sm:$0xff]  }
 0x15c   :  { %1836 = vmatmul.mubr.bf16.gmra.mrb[4].mxu0 %v6708_v56  ;;  %v6748_v56 = vld [vmem:[#allocation2 + $0x6b0] ss:$8 sps:$4 sm:$0xff]  }
 0x15d   :  { %1851 = vmatpush1.bf16.msra.mxu0 %v6667_v57  ;;  %1878 = vmatprep.mubr.bf16.mxu0 %v6714_v58  ;;  %v6753_v57 = vld [vmem:[#allocation2 + $0x6c4] ss:$8 sps:$4 sm:$0xff]   ;;  %v6751_v58 = vld [vmem:[#allocation2 + $0x6c0] ss:$8 sps:$4 sm:$0xff]  }
 0x15e   :  { %1852 = vmatprep.subr.bf16.mxu0 %v6672_v59  ;;  %v6756_v59 = vld [vmem:[#allocation2 + $0x6d4] ss:$8 sps:$4 sm:$0xff]  }
 0x161   :  { %1853 = vmatpush1.bf16.msra.mxu0 %v6670_v63  ;;  %v6765_v63 = vld [vmem:[#allocation2 + $0x6f4] ss:$8 sps:$4 sm:$0xff]  }
 0x162   :  { %1854 = vmatprep.subr.bf16.mxu0 %v6675_v0  ;;  %v6763_v0 = vld [vmem:[#allocation2 + $0x6f0] ss:$8 sps:$4 sm:$0xff]  }
 0x165   :  { %1855 = vmatpush1.bf16.msra.mxu0 %v6673_v1  ;;  %v6778_v1 = vld [vmem:[%s8156_s5 + $0x740] sm:$0xff]  }
 0x166   :  { %1856 = vmatprep.subr.bf16.mxu0 %v6678_v3  ;;  %v6769_v3 = vld [vmem:[%s8151_s0 + $0xa4] ss:$56 sps:$4 sm:$0xff]  }
 0x169   :  { %1857 = vmatpush1.bf16.msra.mxu0 %v6676_v7  ;;  %v6771_v7 = vld [vmem:[%s8151_s0 + $0xa0] ss:$56 sps:$4 sm:$0xff]  }
 0x16a   :  { %1858 = vmatprep.subr.bf16.mxu0 %v6681_v8  ;;  %v6784_v8 = vld [vmem:[%s8156_s5 + $0xe0] sm:$0xff]  }
 0x16b   :  { %5959 = vmatprep.subr.bf16.mxu1 %v6784_v8 }
 0x16c   :  { %5960 = vmatpush3.bf16.msra.mxu1 %v6785_v9 }
 0x16d   :  { %1859 = vmatpush1.bf16.msra.mxu0 %v6679_v10  ;;  %v6786_v10 = vld [vmem:[%s8156_s5 + $0x750] sm:$0xff]  }
 0x16e   :  { %1860 = vmatprep.subr.bf16.mxu0 %v6684_v11  ;;  %v6787_v11 = vld [vmem:[%s8156_s5 + $0x710] sm:$0xff]  }
 0x171   :  { %1861 = vmatpush1.bf16.msra.mxu0 %v6682_v12  ;;  %v6788_v12 = vld [vmem:[%s8156_s5 + $0xe8] sm:$0xff]  }
 0x172   :  { %1862 = vmatprep.subr.bf16.mxu0 %v6687_v13  ;;  %v6789_v13 = vld [vmem:[%s8156_s5 + $0xa8] sm:$0xff]   ;;  %5961 = vmatprep.subr.bf16.mxu1 %v6788_v12 }
 0x173   :  { %5962 = vmatpush3.bf16.msra.mxu1 %v6789_v13 }
 0x175   :  { %1863 = vmatpush1.bf16.msra.mxu0 %v6685_v14  ;;  %v6790_v14 = vld [vmem:[%s8156_s5 + $0x758] sm:$0xff]  }
 0x176   :  { %1864 = vmatprep.subr.bf16.mxu0 %v6690_v15  ;;  %v6791_v15 = vld [vmem:[%s8156_s5 + $0x718] sm:$0xff]  }
 0x179   :  { %1865 = vmatpush1.bf16.msra.mxu0 %v6688_v16  ;;  %v6792_v16 = vld [vmem:[%s8156_s5 + $0xf0] sm:$0xff]  }
 0x17a   :  { %1866 = vmatprep.subr.bf16.mxu0 %v6693_v17  ;;  %v6793_v17 = vld [vmem:[%s8156_s5 + $0xb0] sm:$0xff]   ;;  %5963 = vmatprep.subr.bf16.mxu1 %v6792_v16 }
 0x17b   :  { %5964 = vmatpush3.bf16.msra.mxu1 %v6793_v17 }
 0x17d   :  { %1867 = vmatpush1.bf16.msra.mxu0 %v6691_v18  ;;  %v6794_v18 = vld [vmem:[%s8156_s5 + $0x760] sm:$0xff]  }
 0x17e   :  { %1868 = vmatprep.subr.bf16.mxu0 %v6696_v19  ;;  %v6795_v19 = vld [vmem:[%s8156_s5 + $0x720] sm:$0xff]  }
 0x181   :  { %1869 = vmatpush1.bf16.msra.mxu0 %v6694_v20  ;;  %v6796_v20 = vld [vmem:[%s8156_s5 + $0xf8] sm:$0xff]  }
 0x182   :  { %1870 = vmatprep.subr.bf16.mxu0 %v6699_v21  ;;  %v6797_v21 = vld [vmem:[%s8156_s5 + $0xb8] sm:$0xff]   ;;  %5965 = vmatprep.subr.bf16.mxu1 %v6796_v20 }
 0x183   :  { %5966 = vmatpush3.bf16.msra.mxu1 %v6797_v21 }
 0x185   :  { %1871 = vmatpush1.bf16.msra.mxu0 %v6697_v22  ;;  %v6798_v22 = vld [vmem:[%s8156_s5 + $0x768] sm:$0xff]  }
 0x186   :  { %1872 = vmatprep.subr.bf16.mxu0 %v6702_v23  ;;  %v6799_v23 = vld [vmem:[%s8156_s5 + $0x728] sm:$0xff]  }
 0x189   :  { %1873 = vmatpush1.bf16.msra.mxu0 %v6700_v24  ;;  %v6800_v24 = vld [vmem:[%s8156_s5 + $0x40] sm:$0xff]  }
 0x18a   :  { %1874 = vmatprep.subr.bf16.mxu0 %v6707_v25  ;;  %5973 = vmatprep.subr.bf16.mxu1 %v6800_v24  ;;  %v6802_v25 = vld [vmem:[%s8156_s5 + $0x770] sm:$0xff]   ;;  %v6805_v24 = vld [vmem:[%s8156_s5 + $0x8] sm:$0xff]  }
 0x18d   :  { %1875 = vmatpush1.bf16.msra.mxu0 %v6705_v26  ;;  %v6803_v26 = vld [vmem:[%s8156_s5 + $0x730] sm:$0xff]  }
 0x18e   :  { %1876 = vmatprep.subr.bf16.mxu0 %v6711_v27  ;;  %v6806_v27 = vld [vmem:[%s8156_s5 + $0x778] sm:$0xff]  }
 0x191   :  { %1877 = vmatpush1.bf16.msra.mxu0 %v6709_v28  ;;  %v6807_v28 = vld [vmem:[%s8156_s5 + $0x738] sm:$0xff]  }
 0x192   :  { %1899 = vmatprep.subr.bf16.mxu0 %v6717_v29  ;;  %v311_v29 = vlaneseq }
 0x194   :  { %1879 = vmatmul.mubr.bf16.vlgmr.msra.gmra.mrb[0].mxu0 %v6712_v30  ;;  %v312_v30 = vshrl.u32 %v311_v29, 7  ;;  %v6809_v29 = vld [vmem:[%s8156_s5 + $0x10] sm:$0xff]  }
 0x195   :  { %1900 = vmatpush1.bf16.msra.mxu0 %v6715_v31  ;;  %1888 = vmatprep.mubr.bf16.mxu0 %v6757_v32  ;;  %v309_v32 = vld [vmem:[%s8153_s2] sm:$0x3]  ;;  %s7089_s2 = smov [#allocation5]  }
 0x196   :  { %1901 = vmatprep.subr.bf16.mxu0 %v6720_v33  ;;  %v313_v31 = vsub.s32 0, %v312_v30  ;;  %v317_v33 = vsub.s32 1, %v312_v30 }
 0x199   :  { %1902 = vmatpush1.bf16.msra.mxu0 %v6718_v34  ;;  %v314_v34 = vrot.slane %v309_v32, %v313_v31 }
 0x19a   :  { %1903 = vmatprep.subr.bf16.mxu0 %v6723_v35  ;;  %v1960_v35 = vld [vmem:[%s8154_s3] sm:$0x3]  ;;  %s4936_s3 = sshll.u32 %s7089_s2, 4  ;;  %s4937_s3 = int_to_ptr.vmem [resolvable:$true] %s4936_s3 }
 0x19b   :  { %p7063_p9 = scmp.lt.s32.totalorder %s4937_s3, %s4937_s3 }
 0x19c   :  { %1889 = vmatmul.mubr.bf16.gmra.mrb[4].mxu0 %v6759_v36  ;;  %v318_v36 = vrot.slane %v309_v32, %v317_v33  ;;  %v6811_v32 = vld [vmem:[%s8156_s5 + $0x18] sm:$0xff]  }
 0x19d   :  { %1904 = vmatpush1.bf16.msra.mxu0 %v6721_v37  ;;  %1931 = vmatprep.mubr.bf16.mxu0 %v6768_v38  ;;  %v1980_v38 = vld [vmem:[%s8155_s4] sm:$0x3] }
 0x19e   :  { %1905 = vmatprep.subr.bf16.mxu0 %v6726_v39 }
 0x1a1   :  { %1906 = vmatpush1.bf16.msra.mxu0 %v6724_v40  ;;  %v1965_v40 = vrot.slane %v1960_v35, %v313_v31 }
 0x1a2   :  { %1907 = vmatprep.subr.bf16.mxu0 %v6729_v41 }
 0x1a5   :  { %1908 = vmatpush1.bf16.msra.mxu0 %v6727_v42 }
 0x1a6   :  { %1909 = vmatprep.subr.bf16.mxu0 %v6732_v43  ;;  %v1969_v43 = vrot.slane %v1960_v35, %v317_v33  ;;  %v6814_v35 = vld [vmem:[%s8156_s5 + $0x68] sm:$0xff]  }
 0x1a9   :  { %1910 = vmatpush1.bf16.msra.mxu0 %v6730_v44 }
 0x1aa   :  { %1911 = vmatprep.subr.bf16.mxu0 %v6735_v45 }
 0x1ad   :  { %1912 = vmatpush1.bf16.msra.mxu0 %v6733_v46  ;;  %v1985_v46 = vrot.slane %v1980_v38, %v313_v31  ;;  %v6810_v31 = vld [vmem:[%s8156_s5 + $0x58] sm:$0xff]  }
 0x1ae   :  { %1913 = vmatprep.subr.bf16.mxu0 %v6738_v47 }
 0x1b1   :  { %1914 = vmatpush1.bf16.msra.mxu0 %v6736_v48 }
 0x1b2   :  { %1915 = vmatprep.subr.bf16.mxu0 %v6741_v49 }
 0x1b5   :  { %1916 = vmatpush1.bf16.msra.mxu0 %v6739_v50  ;;  %v1989_v50 = vrot.slane %v1980_v38, %v317_v33  ;;  %v6812_v33 = vld [vmem:[%s8156_s5 + $0x60] sm:$0xff]   ;;  %v6817_v38 = vld [vmem:[%s8156_s5 + $0x30] sm:$0xff]  }
 0x1b6   :  { %1917 = vmatprep.subr.bf16.mxu0 %v6744_v51 }
 0x1b9   :  { %1918 = vmatpush1.bf16.msra.mxu0 %v6742_v52 }
 0x1ba   :  { %1919 = vmatprep.subr.bf16.mxu0 %v6747_v53 }
 0x1bd   :  { %1920 = vmatpush1.bf16.msra.mxu0 %v6745_v54 }
 0x1be   :  { %1921 = vmatprep.subr.bf16.mxu0 %v6750_v55 }
 0x1c1   :  { %1922 = vmatpush1.bf16.msra.mxu0 %v6748_v56 }
 0x1c2   :  { %1923 = vmatprep.subr.bf16.mxu0 %v6753_v57 }
 0x1c5   :  { %1924 = vmatpush1.bf16.msra.mxu0 %v6751_v58 }
 0x1c6   :  { %1925 = vmatprep.subr.bf16.mxu0 %v6756_v59 }
 0x1c9   :  { %1926 = vmatpush1.bf16.msra.mxu0 %v6754_v60 }
 0x1ca   :  { %1927 = vmatprep.subr.bf16.mxu0 %v6762_v61 }
 0x1cd   :  { %1928 = vmatpush1.bf16.msra.mxu0 %v6760_v62 }
 0x1ce   :  { %1929 = vmatprep.subr.bf16.mxu0 %v6765_v63 }
 0x1d1   :  { %1930 = vmatpush1.bf16.msra.mxu0 %v6763_v0 }
 0x1d2   :  { %6259 = vmatprep.subr.bf16.mxu0 %v6778_v1 }
 0x1d4   :  { %1932 = vmatmul.mubr.bf16.vlgmr.msra.gmra.mrb[0].mxu0 %v6766_v2 }
 0x1d5   :  { %1941 = vmatprep.mubr.bf16.mxu0 %v6769_v3  ;;  %6260 = vmatpush3.bf16.msra.mxu0 %v6779_v4 }
 0x1d6   :  { %6261 = vmatprep.subr.bf16.mxu0 %v6782_v5 }
 0x1d9   :  { %6262 = vmatpush3.bf16.msra.mxu0 %v6783_v6 }
 0x1da   :  { %6263 = vmatprep.subr.bf16.mxu0 %v6786_v10 }
 0x1dc   :  { %1942 = vmatmul.mubr.bf16.gmra.mrb[4].mxu0 %v6771_v7 }
 0x1dd   :  { %6264 = vmatpush3.bf16.msra.mxu0 %v6787_v11 }
 0x1de   :  { %6265 = vmatprep.subr.bf16.mxu0 %v6790_v14 }
 0x1e1   :  { %6266 = vmatpush3.bf16.msra.mxu0 %v6791_v15  ;;  %v6801_v15 = vld [vmem:[%s8156_s5] sm:$0xff]  }
 0x1e2   :  { %6267 = vmatprep.subr.bf16.mxu0 %v6794_v18 }
 0x1e5   :  { %6268 = vmatpush3.bf16.msra.mxu0 %v6795_v19  ;;  %v6804_v19 = vld [vmem:[%s8156_s5 + $0x48] sm:$0xff]  }
 0x1e6   :  { %6269 = vmatprep.subr.bf16.mxu0 %v6798_v22 }
 0x1e9   :  { %6270 = vmatpush3.bf16.msra.mxu0 %v6799_v23 }
 0x1ea   :  { %6271 = vmatprep.subr.bf16.mxu0 %v6802_v25 }
 0x1ed   :  { %6272 = vmatpush3.bf16.msra.mxu0 %v6803_v26  ;;  %v6808_v26 = vld [vmem:[%s8156_s5 + $0x50] sm:$0xff]  }
 0x1ee   :  { %6273 = vmatprep.subr.bf16.mxu0 %v6806_v27 }
 0x1f1   :  { %6274 = vmatpush3.bf16.msra.mxu0 %v6807_v28 }
 0x2a7   :  { %v1933_v37 = vpop.f32.mrb[0].mxu0 }
 0x2a8   :  { %v6332_v39 = vadd.f32 %v1933_v37, %v314_v34  ;;  %v1935_v41 = vpop.f32.mrb[1].mxu0  ;;  %v6816_v37 = vld [vmem:[%s8156_s5 + $0x70] sm:$0xff]  }
 0x2a9   :  { %v6333_v42 = vadd.f32 %v1935_v41, %v318_v36  ;;  %v1937_v44 = vpop.f32.mrb[2].mxu0  ;;  %v6820_v41 = vld [vmem:[%s8156_s5 + $0x140] sm:$0xff]  }
 0x2aa   :  { %v1952_v45 = vmax.f32 %v6332_v39, 0.0  ;;  %v6334_v47 = vadd.f32 %v1937_v44, %v314_v34  ;;  %v1939_v48 = vpop.f32.mrb[3].mxu0  ;;  %v6818_v39 = vld [vmem:[%s8156_s5 + $0x78] sm:$0xff]  }
 0x2ab   :  { %v1953_v49 = vmax.f32 %v6333_v42, 0.0  ;;  %v6335_v51 = vadd.f32 %v1939_v48, %v318_v36  ;;  %v6821_v42 = vld [vmem:[%s8156_s5 + $0x100] sm:$0xff]   ;;  %v6826_v48 = vld [vmem:[%s8156_s5 + $0x158] sm:$0xff]  }
 0x2ac   :  { %v1972_v52 = vmul.f32 %v1965_v40, %v1952_v45  ;;  %v1954_v53 = vmax.f32 %v6334_v47, 0.0  ;;  %v6823_v45 = vld [vmem:[%s8156_s5 + $0x108] sm:$0xff]   ;;  %v6825_v47 = vld [vmem:[%s8156_s5 + $0x110] sm:$0xff]  }
 0x2ad   :  { %v1973_v54 = vmul.f32 %v1969_v43, %v1953_v49  ;;  %v1955_v55 = vmax.f32 %v6335_v51, 0.0  ;;  %v6827_v49 = vld [vmem:[%s8156_s5 + $0x118] sm:$0xff]   ;;  %v6829_v51 = vld [vmem:[%s8156_s5 + $0x120] sm:$0xff]  }
 0x2ae   :  { %v1992_v56 = vadd.f32 %v1985_v46, %v1972_v52  ;;  %v1974_v57 = vmul.f32 %v1965_v40, %v1954_v53  ;;  %v6830_v52 = vld [vmem:[%s8156_s5 + $0x168] sm:$0xff]  }
 0x2af   :  { %v1993_v58 = vadd.f32 %v1989_v50, %v1973_v54  ;;  %v1975_v59 = vmul.f32 %v1969_v43, %v1955_v55  ;;  %v1943_v60 = vpop.f32.mrb[4].mxu0  ;;  %v6831_v53 = vld [vmem:[%s8156_s5 + $0x128] sm:$0xff]   ;;  %v6832_v54 = vld [vmem:[%s8156_s5 + $0x170] sm:$0xff]  }
 0x2b0   :  { %2000 = vst [vmem:[%s8162_s11] sm:$0xff] %v1992_v56  ;;  %v1994_v61 = vadd.f32 %v1985_v46, %v1974_v57  ;;  %v6336_v62 = vadd.f32 %v1943_v60, %v314_v34  ;;  %v1945_v63 = vpop.f32.mrb[5].mxu0  ;;  %v6833_v55 = vld [vmem:[%s8156_s5 + $0x130] sm:$0xff]   ;;  %v6835_v57 = vld [vmem:[%s8156_s5 + $0x138] sm:$0xff]  }
 0x2b1   :  { %2001 = vst [vmem:[%s8162_s11 + $0x8] sm:$0xff] %v1993_v58  ;;  %v1995_v0 = vadd.f32 %v1989_v50, %v1975_v59  ;;  %v6337_v1 = vadd.f32 %v1945_v63, %v318_v36  ;;  %v1947_v2 = vpop.f32.mrb[6].mxu0  ;;  %v6837_v59 = vld [vmem:[%s8156_s5 + $0x180] sm:$0xff]   ;;  %v6839_v63 = vld [vmem:[%s8156_s5 + $0x188] sm:$0xff]  }
 0x2b2   :  { %2002 = vst [vmem:[%s8162_s11 + $0x10] sm:$0xff] %v1994_v61  ;;  %v7373_v3 = vpack.c.bf16 %v1994_v61, %v1992_v56  ;;  %v1956_v4 = vmax.f32 %v6336_v62, 0.0  ;;  %v6338_v5 = vadd.f32 %v1947_v2, %v314_v34  ;;  %v1949_v6 = vpop.f32.mrb[7].mxu0  ;;  %v6813_v34 = vld [vmem:[%s8156_s5 + $0x20] sm:$0xff]   ;;  %v6834_v56 = vld [vmem:[%s8156_s5 + $0x178] sm:$0xff]   ;;  %v6838_v61 = vld [vmem:[%s8156_s5 + $0x1c8] sm:$0xff]  }
 0x2b3   :  { %2003 = vst [vmem:[%s8162_s11 + $0x18] sm:$0xff] %v1995_v0  ;;  %v7378_v7 = vpack.c.bf16 %v1995_v0, %v1993_v58  ;;  %v1957_v8 = vmax.f32 %v6337_v1, 0.0  ;;  %v6339_v9 = vadd.f32 %v1949_v6, %v318_v36  ;;  %v6815_v36 = vld [vmem:[%s8156_s5 + $0x28] sm:$0xff]   ;;  %v6836_v58 = vld [vmem:[%s8156_s5 + $0x1c0] sm:$0xff]   ;;  %v6840_v0 = vld [vmem:[%s8156_s5 + $0x1d0] sm:$0xff]  }
 0x2b4   :  { %v1976_v10 = vmul.f32 %v1965_v40, %v1956_v4  ;;  %v1958_v11 = vmax.f32 %v6338_v5, 0.0  ;;  %v2079_v18 = vrot.slane %v7373_v3, 1  ;;  %v2388_v60 = vrot.slane %v7373_v3, 2  ;;  %v6841_v1 = vld [vmem:[%s8156_s5 + $0x190] sm:$0xff]   ;;  %v6842_v2 = vld [vmem:[%s8156_s5 + $0x1d8] sm:$0xff]   ;;  %v6844_v5 = vld [vmem:[%s8156_s5 + $0x1e0] sm:$0xff]  }
 0x2b5   :  { %v1977_v12 = vmul.f32 %v1969_v43, %v1957_v8  ;;  %v1959_v13 = vmax.f32 %v6339_v9, 0.0  ;;  %v2080_v14 = vrot.slane %v7378_v7, 1  ;;  %v2389_v44 = vrot.slane %v7378_v7, 2  ;;  %v6843_v4 = vld [vmem:[%s8156_s5 + $0x198] sm:$0xff]   ;;  %v6845_v6 = vld [vmem:[%s8156_s5 + $0x1a0] sm:$0xff]   ;;  %v6846_v8 = vld [vmem:[%s8156_s5 + $0x1e8] sm:$0xff]  }
 0x2b6   :  { %v1996_v16 = vadd.f32 %v1985_v46, %v1976_v10  ;;  %v1978_v17 = vmul.f32 %v1965_v40, %v1958_v11  ;;  %v6819_v40 = vld [vmem:[%s8156_s5 + $0x38] sm:$0xff]   ;;  %v2563_v62 = vrot.slane %v7378_v7, 3  ;;  %v6847_v9 = vld [vmem:[%s8156_s5 + $0x1a8] sm:$0xff]   ;;  %v6848_v10 = vld [vmem:[%s8156_s5 + $0x1f0] sm:$0xff]  }
 0x2b7   :  { %v1997_v20 = vadd.f32 %v1989_v50, %v1977_v12  ;;  %v1979_v21 = vmul.f32 %v1969_v43, %v1959_v13  ;;  %2211 = vmatprep.mubr.bf16.mxu1 %v2080_v14  ;;  %v6822_v43 = vld [vmem:[%s8156_s5 + $0x148] sm:$0xff]   ;;  %v6849_v11 = vld [vmem:[%s8156_s5 + $0x1b0] sm:$0xff]   ;;  %v6850_v12 = vld [vmem:[%s8156_s5 + $0x1f8] sm:$0xff]  }
 0x2b8   :  { %2004 = vst [vmem:[%s8162_s11 + $0x20] sm:$0xff] %v1996_v16  ;;  %v1998_v22 = vadd.f32 %v1985_v46, %v1978_v17  ;;  %2212 = vmatmul.mubr.bf16.vlgmr.msra.gmra.mrb[0].mxu1 %v2079_v18  ;;  %v6824_v46 = vld [vmem:[%s8156_s5 + $0x150] sm:$0xff]   ;;  %v6851_v13 = vld [vmem:[%s8156_s5 + $0x1b8] sm:$0xff]   ;;  %v6852_v14 = vld [vmem:[%s8156_s5 + $0x240] sm:$0xff]   ;;  %v2737_v18 = vrot.slane %v7378_v7, 4 }
 0x2b9   :  { %2005 = vst [vmem:[%s8162_s11 + $0x28] sm:$0xff] %v1997_v20  ;;  %v1999_v23 = vadd.f32 %v1989_v50, %v1979_v21  ;;  %5974 = vmatpush3.bf16.msra.mxu1 %v6801_v15  ;;  %2347 = vmatprep.mubr.bf16.mxu1 %v7378_v7  ;;  %v6828_v50 = vld [vmem:[%s8156_s5 + $0x160] sm:$0xff]   ;;  %v6854_v17 = vld [vmem:[%s8156_s5 + $0x248] sm:$0xff]   ;;  %v6857_v21 = vld [vmem:[%s8156_s5 + $0x210] sm:$0xff]  }
 0x2ba   :  { %2006 = vst [vmem:[%s8162_s11 + $0x30] sm:$0xff] %v1998_v22  ;;  %v7401_v25 = vpack.c.bf16 %v1998_v22, %v1996_v16  ;;  %5975 = vmatprep.subr.bf16.mxu1 %v6804_v19  ;;  %v6853_v15 = vld [vmem:[%s8156_s5 + $0x200] sm:$0xff]   ;;  %v2562_v16 = vrot.slane %v7373_v3, 3  ;;  %v6855_v19 = vld [vmem:[%s8156_s5 + $0x208] sm:$0xff]   ;;  %v6858_v22 = vld [vmem:[%s8156_s5 + $0x258] sm:$0xff]  }
 0x2bb   :  { %2007 = vst [vmem:[%s8162_s11 + $0x38] sm:$0xff] %v1999_v23  ;;  %v7409_v27 = vpack.c.bf16 %v1999_v23, %v1997_v20  ;;  %v6856_v20 = vld [vmem:[%s8156_s5 + $0x250] sm:$0xff]   ;;  %v6859_v23 = vld [vmem:[%s8156_s5 + $0x218] sm:$0xff]  }
 0x2bc   :  { %v4474_v30 = vrot.slane %v7401_v25, 6 }
 0x2bd   :  { %5976 = vmatpush3.bf16.msra.mxu1 %v6805_v24  ;;  %v4475_v28 = vrot.slane %v7409_v27, 6  ;;  %v6860_v24 = vld [vmem:[%s8156_s5 + $0x260] sm:$0xff]  }
 0x2be   :  { %5977 = vmatprep.subr.bf16.mxu1 %v6808_v26  ;;  %v6861_v26 = vld [vmem:[%s8156_s5 + $0x220] sm:$0xff]  }
 0x2bf   :  { %4606 = vmatprep.mubr.bf16.mxu0 %v4475_v28  ;;  %v6862_v28 = vld [vmem:[%s8156_s5 + $0x268] sm:$0xff]  }
 0x2c0   :  { %4607 = vmatmul.mubr.bf16.vlgmr.msra.gmra.mrb[8].mxu0 %v4474_v30  ;;  %v6864_v30 = vld [vmem:[%s8156_s5 + $0x270] sm:$0xff]  }
 0x2c1   :  { %5978 = vmatpush3.bf16.msra.mxu1 %v6809_v29  ;;  %v6863_v29 = vld [vmem:[%s8156_s5 + $0x228] sm:$0xff]  }
 0x2c2   :  { %5979 = vmatprep.subr.bf16.mxu1 %v6810_v31  ;;  %v6865_v31 = vld [vmem:[%s8156_s5 + $0x230] sm:$0xff]  }
 0x2c5   :  { %5980 = vmatpush3.bf16.msra.mxu1 %v6811_v32  ;;  %v6866_v32 = vld [vmem:[%s8156_s5 + $0x278] sm:$0xff]  }
 0x2c6   :  { %5981 = vmatprep.subr.bf16.mxu1 %v6812_v33  ;;  %v6867_v33 = vld [vmem:[%s8156_s5 + $0x238] sm:$0xff]  }
 0x2c9   :  { %5982 = vmatpush3.bf16.msra.mxu1 %v6813_v34  ;;  %v6868_v34 = vld [vmem:[%s8156_s5 + $0x2c0] sm:$0xff]  }
 0x2ca   :  { %5983 = vmatprep.subr.bf16.mxu1 %v6814_v35  ;;  %v6869_v35 = vld [vmem:[%s8156_s5 + $0x280] sm:$0xff]  }
 0x2cd   :  { %5984 = vmatpush3.bf16.msra.mxu1 %v6815_v36  ;;  %v2736_v36 = vrot.slane %v7373_v3, 4 }
 0x2ce   :  { %5985 = vmatprep.subr.bf16.mxu1 %v6816_v37  ;;  %v6870_v37 = vld [vmem:[%s8156_s5 + $0x2c8] sm:$0xff]  }
 0x2d1   :  { %5986 = vmatpush3.bf16.msra.mxu1 %v6817_v38  ;;  %v2911_v38 = vrot.slane %v7378_v7, 5 }
 0x2d2   :  { %5987 = vmatprep.subr.bf16.mxu1 %v6818_v39  ;;  %v6871_v39 = vld [vmem:[%s8156_s5 + $0x288] sm:$0xff]  }
 0x2d5   :  { %5988 = vmatpush3.bf16.msra.mxu1 %v6819_v40  ;;  %v6872_v40 = vld [vmem:[%s8156_s5 + $0x2d0] sm:$0xff]  }
 0x2d6   :  { %5995 = vmatprep.subr.bf16.mxu1 %v6820_v41  ;;  %v6873_v41 = vld [vmem:[%s8156_s5 + $0x290] sm:$0xff]  }
 0x2d8   :  { %2348 = vmatmul.mubr.bf16.vlgmr.msra.gmra.mrb[4].mxu1 %v7373_v3 }
 0x2d9   :  { %5996 = vmatpush3.bf16.msra.mxu1 %v6821_v42  ;;  %2520 = vmatprep.mubr.bf16.mxu1 %v2389_v44  ;;  %v6874_v42 = vld [vmem:[%s8156_s5 + $0x2d8] sm:$0xff]   ;;  %v6876_v44 = vld [vmem:[%s8156_s5 + $0x2e0] sm:$0xff]  }
 0x2da   :  { %5997 = vmatprep.subr.bf16.mxu1 %v6822_v43  ;;  %v6875_v43 = vld [vmem:[%s8156_s5 + $0x298] sm:$0xff]  }
 0x2dd   :  { %5998 = vmatpush3.bf16.msra.mxu1 %v6823_v45  ;;  %v6877_v45 = vld [vmem:[%s8156_s5 + $0x2a0] sm:$0xff]  }
 0x2de   :  { %5999 = vmatprep.subr.bf16.mxu1 %v6824_v46  ;;  %v6878_v46 = vld [vmem:[%s8156_s5 + $0x2e8] sm:$0xff]  }
 0x2e1   :  { %6000 = vmatpush3.bf16.msra.mxu1 %v6825_v47  ;;  %v6879_v47 = vld [vmem:[%s8156_s5 + $0x2a8] sm:$0xff]  }
 0x2e2   :  { %6001 = vmatprep.subr.bf16.mxu1 %v6826_v48  ;;  %v6880_v48 = vld [vmem:[%s8156_s5 + $0x2f0] sm:$0xff]  }
 0x2e5   :  { %6002 = vmatpush3.bf16.msra.mxu1 %v6827_v49  ;;  %v6881_v49 = vld [vmem:[%s8156_s5 + $0x2b0] sm:$0xff]  }
 0x2e6   :  { %6003 = vmatprep.subr.bf16.mxu1 %v6828_v50  ;;  %v6882_v50 = vld [vmem:[%s8156_s5 + $0x2f8] sm:$0xff]  }
 0x2e9   :  { %6004 = vmatpush3.bf16.msra.mxu1 %v6829_v51  ;;  %v6883_v51 = vld [vmem:[%s8156_s5 + $0x2b8] sm:$0xff]  }
 0x2ea   :  { %6005 = vmatprep.subr.bf16.mxu1 %v6830_v52  ;;  %v6884_v52 = vld [vmem:[%s8156_s5 + $0x340] sm:$0xff]  }
 0x2ed   :  { %6006 = vmatpush3.bf16.msra.mxu1 %v6831_v53  ;;  %v6885_v53 = vld [vmem:[%s8156_s5 + $0x300] sm:$0xff]  }
 0x2ee   :  { %6007 = vmatprep.subr.bf16.mxu1 %v6832_v54  ;;  %v2910_v54 = vrot.slane %v7373_v3, 5 }
 0x2f1   :  { %6008 = vmatpush3.bf16.msra.mxu1 %v6833_v55  ;;  %v6886_v55 = vld [vmem:[%s8156_s5 + $0x348] sm:$0xff]  }
 0x2f2   :  { %6009 = vmatprep.subr.bf16.mxu1 %v6834_v56  ;;  %v3085_v56 = vrot.slane %v7378_v7, 6 }
 0x2f5   :  { %6010 = vmatpush3.bf16.msra.mxu1 %v6835_v57  ;;  %v6887_v57 = vld [vmem:[%s8156_s5 + $0x308] sm:$0xff]  }
 0x2f6   :  { %6017 = vmatprep.subr.bf16.mxu1 %v6836_v58  ;;  %v6888_v58 = vld [vmem:[%s8156_s5 + $0x350] sm:$0xff]  }
 0x2f8   :  { %2521 = vmatmul.mubr.bf16.vlgmr.msra.gmra.mrb[8].mxu1 %v2388_v60  ;;  %v6890_v60 = vld [vmem:[%s8156_s5 + $0x358] sm:$0xff]  }
 0x2f9   :  { %6018 = vmatpush3.bf16.msra.mxu1 %v6837_v59  ;;  %2694 = vmatprep.mubr.bf16.mxu1 %v2563_v62  ;;  %v6889_v59 = vld [vmem:[%s8156_s5 + $0x310] sm:$0xff]   ;;  %v6892_v62 = vld [vmem:[%s8156_s5 + $0x360] sm:$0xff]  }
 0x2fa   :  { %6019 = vmatprep.subr.bf16.mxu1 %v6838_v61  ;;  %v6891_v61 = vld [vmem:[%s8156_s5 + $0x318] sm:$0xff]  }
 0x2fd   :  { %6020 = vmatpush3.bf16.msra.mxu1 %v6839_v63  ;;  %v6893_v63 = vld [vmem:[%s8156_s5 + $0x320] sm:$0xff]  }
 0x2fe   :  { %6021 = vmatprep.subr.bf16.mxu1 %v6840_v0  ;;  %v6894_v0 = vld [vmem:[%s8156_s5 + $0x368] sm:$0xff]  }
 0x301   :  { %6022 = vmatpush3.bf16.msra.mxu1 %v6841_v1  ;;  %v6895_v1 = vld [vmem:[%s8156_s5 + $0x328] sm:$0xff]  }
 0x302   :  { %6023 = vmatprep.subr.bf16.mxu1 %v6842_v2  ;;  %v6896_v2 = vld [vmem:[%s8156_s5 + $0x370] sm:$0xff]  }
 0x305   :  { %6024 = vmatpush3.bf16.msra.mxu1 %v6843_v4  ;;  %v6897_v4 = vld [vmem:[%s8156_s5 + $0x330] sm:$0xff]  }
 0x306   :  { %6025 = vmatprep.subr.bf16.mxu1 %v6844_v5  ;;  %v6898_v5 = vld [vmem:[%s8156_s5 + $0x378] sm:$0xff]  }
 0x309   :  { %6026 = vmatpush3.bf16.msra.mxu1 %v6845_v6  ;;  %v6899_v6 = vld [vmem:[%s8156_s5 + $0x338] sm:$0xff]  }
 0x30a   :  { %6027 = vmatprep.subr.bf16.mxu1 %v6846_v8  ;;  %v6900_v8 = vld [vmem:[%s8156_s5 + $0x3c0] sm:$0xff]  }
 0x30d   :  { %6028 = vmatpush3.bf16.msra.mxu1 %v6847_v9  ;;  %v6901_v9 = vld [vmem:[%s8156_s5 + $0x380] sm:$0xff]  }
 0x30e   :  { %6029 = vmatprep.subr.bf16.mxu1 %v6848_v10  ;;  %v3084_v10 = vrot.slane %v7373_v3, 6 }
 0x311   :  { %6030 = vmatpush3.bf16.msra.mxu1 %v6849_v11  ;;  %v6902_v11 = vld [vmem:[%s8156_s5 + $0x3c8] sm:$0xff]  }
 0x312   :  { %6031 = vmatprep.subr.bf16.mxu1 %v6850_v12  ;;  %v3259_v12 = vrot.slane %v7378_v7, 7  ;;  %v6906_v7 = vld [vmem:[%s8156_s5 + $0x3d8] sm:$0xff]  }
 0x315   :  { %6032 = vmatpush3.bf16.msra.mxu1 %v6851_v13  ;;  %v6903_v13 = vld [vmem:[%s8156_s5 + $0x388] sm:$0xff]  }
 0x316   :  { %6039 = vmatprep.subr.bf16.mxu1 %v6852_v14  ;;  %v6904_v14 = vld [vmem:[%s8156_s5 + $0x3d0] sm:$0xff]  }
 0x318   :  { %2695 = vmatmul.mubr.bf16.vlgmr.msra.gmra.mrb[12].mxu1 %v2562_v16  ;;  %v6907_v16 = vld [vmem:[%s8156_s5 + $0x398] sm:$0xff]  }
 0x319   :  { %6040 = vmatpush3.bf16.msra.mxu1 %v6853_v15  ;;  %2868 = vmatprep.mubr.bf16.mxu1 %v2737_v18  ;;  %v6905_v15 = vld [vmem:[%s8156_s5 + $0x390] sm:$0xff]   ;;  %v6909_v18 = vld [vmem:[%s8156_s5 + $0x3a0] sm:$0xff]  }
 0x31a   :  { %6041 = vmatprep.subr.bf16.mxu1 %v6854_v17  ;;  %v6908_v17 = vld [vmem:[%s8156_s5 + $0x3e0] sm:$0xff]  }
 0x31d   :  { %6042 = vmatpush3.bf16.msra.mxu1 %v6855_v19  ;;  %v6910_v19 = vld [vmem:[%s8156_s5 + $0x3e8] sm:$0xff]  }
 0x31e   :  { %6043 = vmatprep.subr.bf16.mxu1 %v6856_v20  ;;  %v6911_v20 = vld [vmem:[%s8156_s5 + $0x3a8] sm:$0xff]  }
 0x321   :  { %6044 = vmatpush3.bf16.msra.mxu1 %v6857_v21  ;;  %v6912_v21 = vld [vmem:[%s8156_s5 + $0x3f0] sm:$0xff]  }
 0x322   :  { %6045 = vmatprep.subr.bf16.mxu1 %v6858_v22 }
 0x325   :  { %6046 = vmatpush3.bf16.msra.mxu1 %v6859_v23 }
 0x326   :  { %6047 = vmatprep.subr.bf16.mxu1 %v6860_v24 }
 0x329   :  { %6048 = vmatpush3.bf16.msra.mxu1 %v6861_v26 }
 0x32a   :  { %6049 = vmatprep.subr.bf16.mxu1 %v6862_v28  ;;  %v6913_v28 = vld [vmem:[%s8156_s5 + $0x3b0] sm:$0xff]  }
 0x32d   :  { %6050 = vmatpush3.bf16.msra.mxu1 %v6863_v29 }
 0x32e   :  { %6051 = vmatprep.subr.bf16.mxu1 %v6864_v30  ;;  %v6914_v30 = vld [vmem:[%s8156_s5 + $0x3f8] sm:$0xff]  }
 0x331   :  { %6052 = vmatpush3.bf16.msra.mxu1 %v6865_v31  ;;  %v6915_v31 = vld [vmem:[%s8156_s5 + $0x3b8] sm:$0xff]  }
 0x332   :  { %6053 = vmatprep.subr.bf16.mxu1 %v6866_v32  ;;  %v6916_v32 = vld [vmem:[%s8156_s5 + $0x440] sm:$0xff]  }
 0x335   :  { %6054 = vmatpush3.bf16.msra.mxu1 %v6867_v33 }
 0x336   :  { %6061 = vmatprep.subr.bf16.mxu1 %v6868_v34 }
 0x338   :  { %2869 = vmatmul.mubr.bf16.vlgmr.msra.gmra.mrb[16].mxu1 %v2736_v36 }
 0x339   :  { %6062 = vmatpush3.bf16.msra.mxu1 %v6869_v35  ;;  %3042 = vmatprep.mubr.bf16.mxu1 %v2911_v38 }
 0x33a   :  { %6063 = vmatprep.subr.bf16.mxu1 %v6870_v37  ;;  %v6917_v37 = vld [vmem:[%s8156_s5 + $0x400] sm:$0xff]  }
 0x33d   :  { %6064 = vmatpush3.bf16.msra.mxu1 %v6871_v39  ;;  %v3258_v39 = vrot.slane %v7373_v3, 7  ;;  %v6921_v3 = vld [vmem:[%s8156_s5 + $0x410] sm:$0xff]  }
 0x33e   :  { %6065 = vmatprep.subr.bf16.mxu1 %v6872_v40  ;;  %v6918_v40 = vld [vmem:[%s8156_s5 + $0x448] sm:$0xff]  }
 0x341   :  { %6066 = vmatpush3.bf16.msra.mxu1 %v6873_v41  ;;  %v6919_v41 = vld [vmem:[%s8156_s5 + $0x408] sm:$0xff]  }
 0x342   :  { %6067 = vmatprep.subr.bf16.mxu1 %v6874_v42  ;;  %v6920_v42 = vld [vmem:[%s8156_s5 + $0x450] sm:$0xff]  }
 0x345   :  { %6068 = vmatpush3.bf16.msra.mxu1 %v6875_v43  ;;  %v6922_v43 = vld [vmem:[%s8156_s5 + $0x458] sm:$0xff]  }
 0x346   :  { %6069 = vmatprep.subr.bf16.mxu1 %v6876_v44  ;;  %v6923_v44 = vld [vmem:[%s8156_s5 + $0x418] sm:$0xff]  }
 0x349   :  { %6070 = vmatpush3.bf16.msra.mxu1 %v6877_v45  ;;  %v6924_v45 = vld [vmem:[%s8156_s5 + $0x460] sm:$0xff]  }
 0x34a   :  { %6071 = vmatprep.subr.bf16.mxu1 %v6878_v46  ;;  %v6925_v46 = vld [vmem:[%s8156_s5 + $0x420] sm:$0xff]  }
 0x34d   :  { %6072 = vmatpush3.bf16.msra.mxu1 %v6879_v47  ;;  %v6926_v47 = vld [vmem:[%s8156_s5 + $0x468] sm:$0xff]  }
 0x34e   :  { %6073 = vmatprep.subr.bf16.mxu1 %v6880_v48  ;;  %v6927_v48 = vld [vmem:[%s8156_s5 + $0x428] sm:$0xff]  }
 0x351   :  { %6074 = vmatpush3.bf16.msra.mxu1 %v6881_v49  ;;  %v6928_v49 = vld [vmem:[%s8156_s5 + $0x470] sm:$0xff]  }
 0x352   :  { %6075 = vmatprep.subr.bf16.mxu1 %v6882_v50 }
 0x355   :  { %6076 = vmatpush3.bf16.msra.mxu1 %v6883_v51 }
 0x356   :  { %6083 = vmatprep.subr.bf16.mxu1 %v6884_v52 }
 0x358   :  { %3043 = vmatmul.mubr.bf16.vlgmr.msra.gmra.mrb[20].mxu1 %v2910_v54  ;;  %v6929_v54 = vld [vmem:[%s8156_s5 + $0x430] sm:$0xff]  }
 0x359   :  { %6084 = vmatpush3.bf16.msra.mxu1 %v6885_v53  ;;  %3216 = vmatprep.mubr.bf16.mxu1 %v3085_v56  ;;  %v6930_v56 = vld [vmem:[%s8156_s5 + $0x478] sm:$0xff]  }
 0x35a   :  { %6085 = vmatprep.subr.bf16.mxu1 %v6886_v55 }
 0x35d   :  { %6086 = vmatpush3.bf16.msra.mxu1 %v6887_v57 }
 0x35e   :  { %6087 = vmatprep.subr.bf16.mxu1 %v6888_v58  ;;  %v6931_v58 = vld [vmem:[%s8156_s5 + $0x438] sm:$0xff]  }
 0x361   :  { %6088 = vmatpush3.bf16.msra.mxu1 %v6889_v59  ;;  %v6932_v59 = vld [vmem:[%s8156_s5 + $0x4c0] sm:$0xff]  }
 0x362   :  { %6089 = vmatprep.subr.bf16.mxu1 %v6890_v60  ;;  %v6933_v60 = vld [vmem:[%s8156_s5 + $0x480] sm:$0xff]  }
 0x365   :  { %6090 = vmatpush3.bf16.msra.mxu1 %v6891_v61  ;;  %v6934_v61 = vld [vmem:[%s8156_s5 + $0x4c8] sm:$0xff]  }
 0x366   :  { %6091 = vmatprep.subr.bf16.mxu1 %v6892_v62  ;;  %v3605_v62 = vrot.slane %v7409_v27, 1 }
 0x369   :  { %6092 = vmatpush3.bf16.msra.mxu1 %v6893_v63  ;;  %v6935_v63 = vld [vmem:[%s8156_s5 + $0x488] sm:$0xff]  }
 0x36a   :  { %6093 = vmatprep.subr.bf16.mxu1 %v6894_v0  ;;  %v6936_v0 = vld [vmem:[%s8156_s5 + $0x4d0] sm:$0xff]  }
 0x36d   :  { %6094 = vmatpush3.bf16.msra.mxu1 %v6895_v1  ;;  %v6937_v1 = vld [vmem:[%s8156_s5 + $0x490] sm:$0xff]  }
 0x36e   :  { %6095 = vmatprep.subr.bf16.mxu1 %v6896_v2  ;;  %v6938_v2 = vld [vmem:[%s8156_s5 + $0x4d8] sm:$0xff]  }
 0x371   :  { %6096 = vmatpush3.bf16.msra.mxu1 %v6897_v4  ;;  %v6939_v4 = vld [vmem:[%s8156_s5 + $0x498] sm:$0xff]  }
 0x372   :  { %6097 = vmatprep.subr.bf16.mxu1 %v6898_v5  ;;  %v6940_v5 = vld [vmem:[%s8156_s5 + $0x4e0] sm:$0xff]  }
 0x375   :  { %6098 = vmatpush3.bf16.msra.mxu1 %v6899_v6  ;;  %v6941_v6 = vld [vmem:[%s8156_s5 + $0x4a0] sm:$0xff]  }
 0x376   :  { %6105 = vmatprep.subr.bf16.mxu1 %v6900_v8  ;;  %v6942_v8 = vld [vmem:[%s8156_s5 + $0x4e8] sm:$0xff]  }
 0x378   :  { %3217 = vmatmul.mubr.bf16.vlgmr.msra.gmra.mrb[24].mxu1 %v3084_v10  ;;  %v6944_v10 = vld [vmem:[%s8156_s5 + $0x4f0] sm:$0xff]  }
 0x379   :  { %6106 = vmatpush3.bf16.msra.mxu1 %v6901_v9  ;;  %3390 = vmatprep.mubr.bf16.mxu1 %v3259_v12  ;;  %v6943_v9 = vld [vmem:[%s8156_s5 + $0x4a8] sm:$0xff]  }
 0x37a   :  { %6107 = vmatprep.subr.bf16.mxu1 %v6902_v11 }
 0x37d   :  { %6108 = vmatpush3.bf16.msra.mxu1 %v6903_v13 }
 0x37e   :  { %6109 = vmatprep.subr.bf16.mxu1 %v6904_v14 }
 0x381   :  { %6110 = vmatpush3.bf16.msra.mxu1 %v6905_v15  ;;  %v6945_v15 = vld [vmem:[%s8156_s5 + $0x4b0] sm:$0xff]  }
 0x382   :  { %6111 = vmatprep.subr.bf16.mxu1 %v6906_v7 }
 0x385   :  { %6112 = vmatpush3.bf16.msra.mxu1 %v6907_v16  ;;  %v6946_v16 = vld [vmem:[%s8156_s5 + $0x4f8] sm:$0xff]  }
 0x386   :  { %6113 = vmatprep.subr.bf16.mxu1 %v6908_v17 }
 0x389   :  { %6114 = vmatpush3.bf16.msra.mxu1 %v6909_v18  ;;  %v6947_v18 = vld [vmem:[%s8156_s5 + $0x4b8] sm:$0xff]  }
 0x38a   :  { %6115 = vmatprep.subr.bf16.mxu1 %v6910_v19  ;;  %v6948_v19 = vld [vmem:[%s8156_s5 + $0x540] sm:$0xff]  }
 0x38b   :  { %v5967_v22 = vpop.f32.mrb[0].mxu1 }
 0x38c   :  { %v5968_v23 = vpop.f32.mrb[1].mxu1 }
 0x38d   :  { %v5969_v24 = vadd.f32 %v5968_v23, %v5967_v22  ;;  %6116 = vmatpush3.bf16.msra.mxu1 %v6911_v20  ;;  %v5970_v26 = vpop.f32.mrb[2].mxu1  ;;  %v6949_v20 = vld [vmem:[%s8156_s5 + $0x500] sm:$0xff]   ;;  %v6950_v22 = vld [vmem:[%s8156_s5 + $0x548] sm:$0xff]   ;;  %v3779_v23 = vrot.slane %v7409_v27, 2 }
 0x38e   :  { %v5971_v29 = vpop.f32.mrb[3].mxu1  ;;  %6117 = vmatprep.subr.bf16.mxu1 %v6912_v21  ;;  %v3604_v21 = vrot.slane %v7401_v25, 1  ;;  %v6952_v26 = vld [vmem:[%s8156_s5 + $0x550] sm:$0xff]  }
 0x38f   :  { %v6954_v29 = vld [vmem:[%s8156_s5 + $0x558] sm:$0xff]  }
 0x391   :  { %6118 = vmatpush3.bf16.msra.mxu1 %v6913_v28  ;;  %v6953_v28 = vld [vmem:[%s8156_s5 + $0x510] sm:$0xff]  }
 0x392   :  { %6119 = vmatprep.subr.bf16.mxu1 %v6914_v30  ;;  %v6955_v30 = vld [vmem:[%s8156_s5 + $0x518] sm:$0xff]  }
 0x393   :  { %v6275_v33 = vpop.f32.mrb[8].mxu0 }
 0x394   :  { %v6276_v34 = vpop.f32.mrb[9].mxu0 }
 0x395   :  { %6120 = vmatpush3.bf16.msra.mxu1 %v6915_v31  ;;  %v7749_v35 = vadd.f32 %v6276_v34, %v6275_v33  ;;  %v6278_v36 = vpop.f32.mrb[10].mxu0  ;;  %v6956_v31 = vld [vmem:[%s8156_s5 + $0x560] sm:$0xff]   ;;  %v6958_v33 = vld [vmem:[%s8156_s5 + $0x568] sm:$0xff]  }
 0x396   :  { %v6279_v38 = vpop.f32.mrb[11].mxu0  ;;  %6127 = vmatprep.subr.bf16.mxu1 %v6916_v32  ;;  %v6957_v32 = vld [vmem:[%s8156_s5 + $0x520] sm:$0xff]   ;;  %v6959_v34 = vld [vmem:[%s8156_s5 + $0x528] sm:$0xff]   ;;  %v6960_v36 = vld [vmem:[%s8156_s5 + $0x570] sm:$0xff]  }
 0x398   :  { %3391 = vmatmul.mubr.bf16.vlgmr.msra.gmra.mrb[28].mxu1 %v3258_v39 }
 0x399   :  { %6128 = vmatpush3.bf16.msra.mxu1 %v6917_v37  ;;  %3560 = vmatprep.mubr.bf16.mxu1 %v7409_v27 }
 0x39a   :  { %6129 = vmatprep.subr.bf16.mxu1 %v6918_v40 }
 0x39d   :  { %6130 = vmatpush3.bf16.msra.mxu1 %v6919_v41  ;;  %v6961_v41 = vld [vmem:[%s8156_s5 + $0x530] sm:$0xff]  }
 0x39e   :  { %6131 = vmatprep.subr.bf16.mxu1 %v6920_v42 }
 0x3a1   :  { %6132 = vmatpush3.bf16.msra.mxu1 %v6921_v3  ;;  %v6962_v3 = vld [vmem:[%s8156_s5 + $0x578] sm:$0xff]  }
 0x3a2   :  { %6133 = vmatprep.subr.bf16.mxu1 %v6922_v43 }
 0x3a5   :  { %6134 = vmatpush3.bf16.msra.mxu1 %v6923_v44  ;;  %v6963_v44 = vld [vmem:[%s8156_s5 + $0x538] sm:$0xff]  }
 0x3a6   :  { %6135 = vmatprep.subr.bf16.mxu1 %v6924_v45  ;;  %v6964_v45 = vld [vmem:[%s8156_s5 + $0x5c0] sm:$0xff]  }
 0x3a9   :  { %6136 = vmatpush3.bf16.msra.mxu1 %v6925_v46  ;;  %v6965_v46 = vld [vmem:[%s8156_s5 + $0x580] sm:$0xff]  }
 0x3aa   :  { %6137 = vmatprep.subr.bf16.mxu1 %v6926_v47  ;;  %v3778_v47 = vrot.slane %v7401_v25, 2 }
 0x3ab   :  { %v5989_v50 = vpop.f32.mrb[4].mxu1 }
 0x3ac   :  { %v5990_v51 = vpop.f32.mrb[5].mxu1 }
 0x3ad   :  { %v5991_v52 = vadd.f32 %v5990_v51, %v5989_v50  ;;  %v5992_v53 = vpop.f32.mrb[6].mxu1  ;;  %6138 = vmatpush3.bf16.msra.mxu1 %v6927_v48  ;;  %v6966_v48 = vld [vmem:[%s8156_s5 + $0x5c8] sm:$0xff]   ;;  %v6968_v51 = vld [vmem:[%s8156_s5 + $0x5d0] sm:$0xff]  }
 0x3ae   :  { %v5993_v55 = vpop.f32.mrb[7].mxu1  ;;  %6139 = vmatprep.subr.bf16.mxu1 %v6928_v49  ;;  %v3953_v49 = vrot.slane %v7409_v27, 3  ;;  %v6967_v50 = vld [vmem:[%s8156_s5 + $0x588] sm:$0xff]   ;;  %v6970_v53 = vld [vmem:[%s8156_s5 + $0x5d8] sm:$0xff]  }
 0x3af   :  { %v2350_v57 = vadd.f32 %v5991_v52, %v5969_v24  ;;  %v6951_v24 = vld [vmem:[%s8156_s5 + $0x508] sm:$0xff]   ;;  %v6969_v52 = vld [vmem:[%s8156_s5 + $0x590] sm:$0xff]   ;;  %v6972_v55 = vld [vmem:[%s8156_s5 + $0x5e0] sm:$0xff]  }
 0x3b1   :  { %6140 = vmatpush3.bf16.msra.mxu1 %v6929_v54  ;;  %v6971_v54 = vld [vmem:[%s8156_s5 + $0x598] sm:$0xff]  }
 0x3b2   :  { %6141 = vmatprep.subr.bf16.mxu1 %v6930_v56  ;;  %v6973_v56 = vld [vmem:[%s8156_s5 + $0x5a0] sm:$0xff]  }
 0x3b5   :  { %6142 = vmatpush3.bf16.msra.mxu1 %v6931_v58  ;;  %v6975_v58 = vld [vmem:[%s8156_s5 + $0x5a8] sm:$0xff]  }
 0x3b6   :  { %6149 = vmatprep.subr.bf16.mxu1 %v6932_v59  ;;  %v6976_v59 = vld [vmem:[%s8156_s5 + $0x5f0] sm:$0xff]  }
 0x3b8   :  { %3561 = vmatmul.mubr.bf16.vlgmr.msra.gmra.mrb[32].mxu1 %v7401_v25 }
 0x3b9   :  { %6150 = vmatpush3.bf16.msra.mxu1 %v6933_v60  ;;  %3736 = vmatprep.mubr.bf16.mxu1 %v3605_v62 }
 0x3ba   :  { %6151 = vmatprep.subr.bf16.mxu1 %v6934_v61 }
 0x3bd   :  { %6152 = vmatpush3.bf16.msra.mxu1 %v6935_v63 }
 0x3be   :  { %6153 = vmatprep.subr.bf16.mxu1 %v6936_v0  ;;  %v6977_v0 = vld [vmem:[%s8156_s5 + $0x5b0] sm:$0xff]  }
 0x3c1   :  { %6154 = vmatpush3.bf16.msra.mxu1 %v6937_v1 }
 0x3c2   :  { %6155 = vmatprep.subr.bf16.mxu1 %v6938_v2  ;;  %v6978_v2 = vld [vmem:[%s8156_s5 + $0x5f8] sm:$0xff]  }
 0x3c5   :  { %6156 = vmatpush3.bf16.msra.mxu1 %v6939_v4 }
 0x3c6   :  { %6157 = vmatprep.subr.bf16.mxu1 %v6940_v5  ;;  %v6979_v5 = vld [vmem:[%s8156_s5 + $0x5b8] sm:$0xff]  }
 0x3c9   :  { %6158 = vmatpush3.bf16.msra.mxu1 %v6941_v6  ;;  %v6980_v6 = vld [vmem:[%s8156_s5 + $0x640] sm:$0xff]  }
 0x3ca   :  { %6159 = vmatprep.subr.bf16.mxu1 %v6942_v8  ;;  %v6981_v8 = vld [vmem:[%s8156_s5 + $0x600] sm:$0xff]  }
 0x3cb   :  { %v6011_v11 = vpop.f32.mrb[8].mxu1 }
 0x3cc   :  { %v6012_v12 = vpop.f32.mrb[9].mxu1 }
 0x3cd   :  { %v6013_v13 = vadd.f32 %v6012_v12, %v6011_v11  ;;  %v6014_v14 = vpop.f32.mrb[10].mxu1  ;;  %6160 = vmatpush3.bf16.msra.mxu1 %v6943_v9  ;;  %v3952_v9 = vrot.slane %v7401_v25, 3  ;;  %v4127_v11 = vrot.slane %v7409_v27, 4  ;;  %v6983_v12 = vld [vmem:[%s8156_s5 + $0x608] sm:$0xff]  }
 0x3ce   :  { %v6015_v7 = vpop.f32.mrb[11].mxu1  ;;  %6161 = vmatprep.subr.bf16.mxu1 %v6944_v10  ;;  %v6982_v10 = vld [vmem:[%s8156_s5 + $0x648] sm:$0xff]   ;;  %v6985_v14 = vld [vmem:[%s8156_s5 + $0x610] sm:$0xff]  }
 0x3cf   :  { %v2528_v17 = vadd.f32 %v6013_v13, %v2350_v57  ;;  %v6974_v57 = vld [vmem:[%s8156_s5 + $0x5e8] sm:$0xff]   ;;  %v6984_v13 = vld [vmem:[%s8156_s5 + $0x650] sm:$0xff]   ;;  %v6987_v7 = vld [vmem:[%s8156_s5 + $0x618] sm:$0xff]  }
 0x3d1   :  { %6162 = vmatpush3.bf16.msra.mxu1 %v6945_v15  ;;  %v6986_v15 = vld [vmem:[%s8156_s5 + $0x658] sm:$0xff]  }
 0x3d2   :  { %6163 = vmatprep.subr.bf16.mxu1 %v6946_v16  ;;  %v6988_v16 = vld [vmem:[%s8156_s5 + $0x660] sm:$0xff]  }
 0x3d5   :  { %6164 = vmatpush3.bf16.msra.mxu1 %v6947_v18  ;;  %v6990_v18 = vld [vmem:[%s8156_s5 + $0x668] sm:$0xff]  }
 0x3d6   :  { %6171 = vmatprep.subr.bf16.mxu1 %v6948_v19  ;;  %v6991_v19 = vld [vmem:[%s8156_s5 + $0x628] sm:$0xff]  }
 0x3d8   :  { %3737 = vmatmul.mubr.bf16.vlgmr.msra.gmra.mrb[36].mxu1 %v3604_v21 }
 0x3d9   :  { %6172 = vmatpush3.bf16.msra.mxu1 %v6949_v20  ;;  %3910 = vmatprep.mubr.bf16.mxu1 %v3779_v23  ;;  %v6992_v20 = vld [vmem:[%s8156_s5 + $0x670] sm:$0xff]  }
 0x3da   :  { %6173 = vmatprep.subr.bf16.mxu1 %v6950_v22 }
 0x3dd   :  { %6174 = vmatpush3.bf16.msra.mxu1 %v6951_v24 }
 0x3de   :  { %6175 = vmatprep.subr.bf16.mxu1 %v6952_v26  ;;  %v6993_v26 = vld [vmem:[%s8156_s5 + $0x630] sm:$0xff]  }
 0x3e1   :  { %6176 = vmatpush3.bf16.msra.mxu1 %v6953_v28 }
 0x3e2   :  { %6177 = vmatprep.subr.bf16.mxu1 %v6954_v29  ;;  %v6994_v29 = vld [vmem:[%s8156_s5 + $0x678] sm:$0xff]  }
 0x3e5   :  { %6178 = vmatpush3.bf16.msra.mxu1 %v6955_v30 }
 0x3e6   :  { %6179 = vmatprep.subr.bf16.mxu1 %v6956_v31  ;;  %v6995_v31 = vld [vmem:[%s8156_s5 + $0x638] sm:$0xff]  }
 0x3e9   :  { %6180 = vmatpush3.bf16.msra.mxu1 %v6957_v32  ;;  %v6996_v32 = vld [vmem:[%s8156_s5 + $0x6c0] sm:$0xff]  }
 0x3ea   :  { %6181 = vmatprep.subr.bf16.mxu1 %v6958_v33  ;;  %v6997_v33 = vld [vmem:[%s8156_s5 + $0x680] sm:$0xff]  }
 0x3eb   :  { %v6033_v37 = vpop.f32.mrb[12].mxu1 }
 0x3ec   :  { %v6034_v38 = vpop.f32.mrb[13].mxu1 }
 0x3ed   :  { %v6035_v39 = vadd.f32 %v6034_v38, %v6033_v37  ;;  %v6036_v40 = vpop.f32.mrb[14].mxu1  ;;  %6182 = vmatpush3.bf16.msra.mxu1 %v6959_v34  ;;  %v4126_v34 = vrot.slane %v7401_v25, 4  ;;  %v4301_v37 = vrot.slane %v7409_v27, 5  ;;  %v6999_v38 = vld [vmem:[%s8156_s5 + $0x688] sm:$0xff]  }
 0x3ee   :  { %v6037_v42 = vpop.f32.mrb[15].mxu1  ;;  %6183 = vmatprep.subr.bf16.mxu1 %v6960_v36  ;;  %v6998_v36 = vld [vmem:[%s8156_s5 + $0x6c8] sm:$0xff]   ;;  %v7001_v40 = vld [vmem:[%s8156_s5 + $0x690] sm:$0xff]  }
 0x3ef   :  { %v2702_v43 = vadd.f32 %v6035_v39, %v2528_v17  ;;  %v6989_v17 = vld [vmem:[%s8156_s5 + $0x620] sm:$0xff]   ;;  %v7000_v39 = vld [vmem:[%s8156_s5 + $0x6d0] sm:$0xff]   ;;  %v7003_v42 = vld [vmem:[%s8156_s5 + $0x698] sm:$0xff]  }
 0x3f1   :  { %6184 = vmatpush3.bf16.msra.mxu1 %v6961_v41  ;;  %v7002_v41 = vld [vmem:[%s8156_s5 + $0x6d8] sm:$0xff]  }
 0x3f2   :  { %6185 = vmatprep.subr.bf16.mxu1 %v6962_v3  ;;  %v7004_v3 = vld [vmem:[%s8156_s5 + $0x6e0] sm:$0xff]  }
 0x3f5   :  { %6186 = vmatpush3.bf16.msra.mxu1 %v6963_v44  ;;  %v7006_v44 = vld [vmem:[%s8156_s5 + $0x6e8] sm:$0xff]  }
 0x3f6   :  { %6193 = vmatprep.subr.bf16.mxu1 %v6964_v45  ;;  %v7007_v45 = vld [vmem:[%s8156_s5 + $0x6a8] sm:$0xff]  }
 0x3f8   :  { %3911 = vmatmul.mubr.bf16.vlgmr.msra.gmra.mrb[40].mxu1 %v3778_v47 }
 0x3f9   :  { %6194 = vmatpush3.bf16.msra.mxu1 %v6965_v46  ;;  %4084 = vmatprep.mubr.bf16.mxu1 %v3953_v49  ;;  %v7008_v46 = vld [vmem:[%s8156_s5 + $0x6f0] sm:$0xff]  }
 0x3fa   :  { %6195 = vmatprep.subr.bf16.mxu1 %v6966_v48 }
 0x3fd   :  { %6196 = vmatpush3.bf16.msra.mxu1 %v6967_v50 }
 0x3fe   :  { %6197 = vmatprep.subr.bf16.mxu1 %v6968_v51  ;;  %v7009_v51 = vld [vmem:[%s8156_s5 + $0x6b0] sm:$0xff]  }
 0x401   :  { %6198 = vmatpush3.bf16.msra.mxu1 %v6969_v52 }
 0x402   :  { %6199 = vmatprep.subr.bf16.mxu1 %v6970_v53  ;;  %v7010_v53 = vld [vmem:[%s8156_s5 + $0x6f8] sm:$0xff]  }
 0x405   :  { %6200 = vmatpush3.bf16.msra.mxu1 %v6971_v54 }
 0x406   :  { %6201 = vmatprep.subr.bf16.mxu1 %v6972_v55  ;;  %v7011_v55 = vld [vmem:[%s8156_s5 + $0x6b8] sm:$0xff]  }
 0x409   :  { %6202 = vmatpush3.bf16.msra.mxu1 %v6973_v56  ;;  %v7012_v56 = vld [vmem:[%s8156_s5 + $0x7c0] sm:$0xff]  }
 0x40a   :  { %6203 = vmatprep.subr.bf16.mxu1 %v6974_v57  ;;  %v7013_v57 = vld [vmem:[%s8156_s5 + $0x780] sm:$0xff]  }
 0x40b   :  { %v6055_v60 = vpop.f32.mrb[16].mxu1 }
 0x40c   :  { %v6056_v61 = vpop.f32.mrb[17].mxu1 }
 0x40d   :  { %v6057_v62 = vadd.f32 %v6056_v61, %v6055_v60  ;;  %v6058_v63 = vpop.f32.mrb[18].mxu1  ;;  %6204 = vmatpush3.bf16.msra.mxu1 %v6975_v58  ;;  %v4300_v58 = vrot.slane %v7401_v25, 5  ;;  %v4649_v60 = vrot.slane %v7409_v27, 7  ;;  %v7015_v61 = vld [vmem:[%s8156_s5 + $0x788] sm:$0xff]   ;;  %v7018_v27 = vld [vmem:[%s8156_s5 + $0x7d8] sm:$0xff]  }
 0x40e   :  { %v6059_v1 = vpop.f32.mrb[19].mxu1  ;;  %6205 = vmatprep.subr.bf16.mxu1 %v6976_v59  ;;  %v7014_v59 = vld [vmem:[%s8156_s5 + $0x7c8] sm:$0xff]   ;;  %v7017_v63 = vld [vmem:[%s8156_s5 + $0x790] sm:$0xff]  }
 0x40f   :  { %v2876_v4 = vadd.f32 %v6057_v62, %v2702_v43  ;;  %v7005_v43 = vld [vmem:[%s8156_s5 + $0x6a0] sm:$0xff]   ;;  %v7016_v62 = vld [vmem:[%s8156_s5 + $0x7d0] sm:$0xff]  }
 0x410   :  { %v7020_v1 = vld [vmem:[%s8156_s5 + $0x7e0] sm:$0xff]  }
 0x411   :  { %6206 = vmatpush3.bf16.msra.mxu1 %v6977_v0  ;;  %v7019_v0 = vld [vmem:[%s8156_s5 + $0x798] sm:$0xff]  }
 0x412   :  { %6207 = vmatprep.subr.bf16.mxu1 %v6978_v2  ;;  %v7021_v2 = vld [vmem:[%s8156_s5 + $0x7a0] sm:$0xff]  }
 0x415   :  { %6208 = vmatpush3.bf16.msra.mxu1 %v6979_v5  ;;  %v7023_v5 = vld [vmem:[%s8156_s5 + $0x7a8] sm:$0xff]  }
 0x416   :  { %6215 = vmatprep.subr.bf16.mxu1 %v6980_v6  ;;  %v7024_v6 = vld [vmem:[%s8156_s5 + $0x7f0] sm:$0xff]  }
 0x418   :  { %4085 = vmatmul.mubr.bf16.vlgmr.msra.gmra.mrb[44].mxu1 %v3952_v9 }
 0x419   :  { %6216 = vmatpush3.bf16.msra.mxu1 %v6981_v8  ;;  %4258 = vmatprep.mubr.bf16.mxu1 %v4127_v11 }
 0x41a   :  { %6217 = vmatprep.subr.bf16.mxu1 %v6982_v10 }
 0x41d   :  { %6218 = vmatpush3.bf16.msra.mxu1 %v6983_v12  ;;  %v7025_v12 = vld [vmem:[%s8156_s5 + $0x7b0] sm:$0xff]  }
 0x41e   :  { %6219 = vmatprep.subr.bf16.mxu1 %v6984_v13 }
 0x421   :  { %6220 = vmatpush3.bf16.msra.mxu1 %v6985_v14  ;;  %v7026_v14 = vld [vmem:[%s8156_s5 + $0x7f8] sm:$0xff]  }
 0x422   :  { %6221 = vmatprep.subr.bf16.mxu1 %v6986_v15 }
 0x425   :  { %6222 = vmatpush3.bf16.msra.mxu1 %v6987_v7  ;;  %v7027_v7 = vld [vmem:[%s8156_s5 + $0x7b8] sm:$0xff]  }
 0x426   :  { %6223 = vmatprep.subr.bf16.mxu1 %v6988_v16  ;;  %v4648_v16 = vrot.slane %v7401_v25, 7  ;;  %v7029_v25 = vld [vmem:[%s8160_s9 + $0x8] sm:$0xff]  }
 0x429   :  { %6224 = vmatpush3.bf16.msra.mxu1 %v6989_v17 }
 0x42a   :  { %6225 = vmatprep.subr.bf16.mxu1 %v6990_v18 }
 0x42b   :  { %v6077_v21 = vpop.f32.mrb[20].mxu1 }
 0x42c   :  { %v6078_v22 = vpop.f32.mrb[21].mxu1 }
 0x42d   :  { %v6079_v23 = vadd.f32 %v6078_v22, %v6077_v21  ;;  %v6080_v24 = vpop.f32.mrb[22].mxu1  ;;  %6226 = vmatpush3.bf16.msra.mxu1 %v6991_v19 }
 0x42e   :  { %v6081_v28 = vpop.f32.mrb[23].mxu1  ;;  %6227 = vmatprep.subr.bf16.mxu1 %v6992_v20 }
 0x42f   :  { %v3050_v30 = vadd.f32 %v6079_v23, %v2876_v4  ;;  %v7022_v4 = vld [vmem:[%s8156_s5 + $0x7e8] sm:$0xff]  }
 0x431   :  { %6228 = vmatpush3.bf16.msra.mxu1 %v6993_v26 }
 0x432   :  { %6229 = vmatprep.subr.bf16.mxu1 %v6994_v29 }
 0x435   :  { %6230 = vmatpush3.bf16.msra.mxu1 %v6995_v31  ;;  %v7028_v31 = vld [vmem:[%s8160_s9] sm:$0xff]  }
 0x436   :  { %6237 = vmatprep.subr.bf16.mxu1 %v6996_v32  ;;  %v7087_v32 = vmov 0.0  }
 0x437   :  { %6312 = vmatprep.subr.bf16.mxu0 %v7087_v32  ;;  %6328 = vmatprep.mubr.msk.bf16.mxu0 %vm7088_vm0, %v7087_v32 }
 0x438   :  { %4259 = vmatmul.mubr.bf16.vlgmr.msra.gmra.mrb[48].mxu1 %v4126_v34  ;;  %6313 = vmatpush3.bf16.msra.mxu0 %v7028_v31  ;;  %v7031_v34 = vld [vmem:[%s8160_s9 + $0x18] sm:$0xff]  }
 0x439   :  { %6238 = vmatpush3.bf16.msra.mxu1 %v6997_v33  ;;  %4432 = vmatprep.mubr.bf16.mxu1 %v4301_v37  ;;  %v7030_v33 = vld [vmem:[%s8160_s9 + $0x10] sm:$0xff]  }
 0x43a   :  { %6239 = vmatprep.subr.bf16.mxu1 %v6998_v36  ;;  %6314 = vmatprep.subr.bf16.mxu0 %v7087_v32 }
 0x43c   :  { %6315 = vmatpush3.bf16.msra.mxu0 %v7029_v25 }
 0x43d   :  { %6240 = vmatpush3.bf16.msra.mxu1 %v6999_v38  ;;  %6316 = vmatprep.subr.bf16.mxu0 %v7087_v32 }
 0x43e   :  { %6241 = vmatprep.subr.bf16.mxu1 %v7000_v39 }
 0x440   :  { %6317 = vmatpush3.bf16.msra.mxu0 %v7030_v33 }
 0x441   :  { %6242 = vmatpush3.bf16.msra.mxu1 %v7001_v40  ;;  %6318 = vmatprep.subr.bf16.mxu0 %v7087_v32 }
 0x442   :  { %6243 = vmatprep.subr.bf16.mxu1 %v7002_v41  ;;  %v7032_v41 = vld [vmem:[%s8160_s9 + $0x20] sm:$0xff]  }
 0x444   :  { %6319 = vmatpush3.bf16.msra.mxu0 %v7031_v34 }
 0x445   :  { %6244 = vmatpush3.bf16.msra.mxu1 %v7003_v42  ;;  %6320 = vmatprep.subr.bf16.mxu0 %v7087_v32 }
 0x446   :  { %6245 = vmatprep.subr.bf16.mxu1 %v7004_v3  ;;  %v7033_v3 = vld [vmem:[%s8160_s9 + $0x28] sm:$0xff]  }
 0x448   :  { %6321 = vmatpush3.bf16.msra.mxu0 %v7032_v41 }
 0x449   :  { %6246 = vmatpush3.bf16.msra.mxu1 %v7005_v43  ;;  %6322 = vmatprep.subr.bf16.mxu0 %v7087_v32  ;;  %v7034_v43 = vld [vmem:[%s8160_s9 + $0x30] sm:$0xff]  }
 0x44a   :  { %6247 = vmatprep.subr.bf16.mxu1 %v7006_v44  ;;  %v7035_v44 = vld [vmem:[%s8160_s9 + $0x38] sm:$0xff]  }
 0x44b   :  { %v6099_v47 = vpop.f32.mrb[24].mxu1 }
 0x44c   :  { %v6100_v48 = vpop.f32.mrb[25].mxu1  ;;  %6323 = vmatpush3.bf16.msra.mxu0 %v7033_v3 }
 0x44d   :  { %v6101_v49 = vadd.f32 %v6100_v48, %v6099_v47  ;;  %v6102_v50 = vpop.f32.mrb[26].mxu1  ;;  %6248 = vmatpush3.bf16.msra.mxu1 %v7007_v45  ;;  %6324 = vmatprep.subr.bf16.mxu0 %v7087_v32 }
 0x44e   :  { %v6103_v52 = vpop.f32.mrb[27].mxu1  ;;  %6249 = vmatprep.subr.bf16.mxu1 %v7008_v46 }
 0x44f   :  { %v3224_v54 = vadd.f32 %v6101_v49, %v3050_v30 }
 0x450   :  { %6325 = vmatpush3.bf16.msra.mxu0 %v7034_v43 }
 0x451   :  { %6250 = vmatpush3.bf16.msra.mxu1 %v7009_v51  ;;  %6326 = vmatprep.subr.bf16.mxu0 %v7087_v32 }
 0x452   :  { %6251 = vmatprep.subr.bf16.mxu1 %v7010_v53 }
 0x454   :  { %6327 = vmatpush3.bf16.msra.mxu0 %v7035_v44 }
 0x455   :  { %6252 = vmatpush3.bf16.msra.mxu1 %v7011_v55 }
 0x456   :  { %6281 = vmatprep.subr.bf16.mxu1 %v7012_v56 }
 0x458   :  { %4433 = vmatmul.mubr.bf16.vlgmr.msra.gmra.mrb[52].mxu1 %v4300_v58 }
 0x459   :  { %6282 = vmatpush3.bf16.msra.mxu1 %v7013_v57  ;;  %4780 = vmatprep.mubr.bf16.mxu1 %v4649_v60 }
 0x45a   :  { %6283 = vmatprep.subr.bf16.mxu1 %v7014_v59 }
 0x45d   :  { %6284 = vmatpush3.bf16.msra.mxu1 %v7015_v61 }
 0x45e   :  { %6285 = vmatprep.subr.bf16.mxu1 %v7016_v62 }
 0x461   :  { %6286 = vmatpush3.bf16.msra.mxu1 %v7017_v63 }
 0x462   :  { %6287 = vmatprep.subr.bf16.mxu1 %v7018_v27 }
 0x465   :  { %6288 = vmatpush3.bf16.msra.mxu1 %v7019_v0 }
 0x466   :  { %6289 = vmatprep.subr.bf16.mxu1 %v7020_v1 }
 0x469   :  { %6290 = vmatpush3.bf16.msra.mxu1 %v7021_v2 }
 0x46a   :  { %6291 = vmatprep.subr.bf16.mxu1 %v7022_v4  ;;  %v5939_v4 = vld [vmem:[%s8157_s6] ss:$0 sm:$0xff]  ;;  %s7058_s6 = scalar_lea.vmem %s4937_s3, 32 }
 0x46b   :  { %v6121_v8 = vpop.f32.mrb[28].mxu1  ;;  %p7059_p8 = scmp.ne.s32.totalorder %s4937_s3, %s7058_s6  ;;  %p7064_p10 = scmp.lt.s32.totalorder %s7058_s6, %s7058_s6 }
 0x46c   :  { %v6122_v9 = vpop.f32.mrb[29].mxu1 }
 0x46d   :  { %v6123_v10 = vadd.f32 %v6122_v9, %v6121_v8  ;;  %v6124_v11 = vpop.f32.mrb[30].mxu1  ;;  %6292 = vmatpush3.bf16.msra.mxu1 %v7023_v5  ;;  %v5940_v9 = vld [vmem:[%s8158_s7] ss:$0 sm:$0xff]  ;;  %p7065_p11 = por %p7064_p10, %p7063_p9 }
 0x46e   :  { %v6125_v13 = vpop.f32.mrb[31].mxu1  ;;  %6293 = vmatprep.subr.bf16.mxu1 %v7024_v6 }
 0x46f   :  { %v3398_v15 = vadd.f32 %v6123_v10, %v3224_v54  ;;  %p7066_p12 = pnand %p7065_p11, %p7059_p8 }
 0x471   :  { %6294 = vmatpush3.bf16.msra.mxu1 %v7025_v12 }
 0x472   :  { %6295 = vmatprep.subr.bf16.mxu1 %v7026_v14 }
 0x475   :  { %6296 = vmatpush3.bf16.msra.mxu1 %v7027_v7 }
 0x478   :  { %4781 = vmatmul.mubr.bf16.vlgmr.msra.gmra.mrb[56].mxu1 %v4648_v16 }
 0x48b   :  { %v6143_v17 = vpop.f32.mrb[32].mxu1 }
 0x48c   :  { %v6144_v18 = vpop.f32.mrb[33].mxu1 }
 0x48d   :  { %v6145_v19 = vadd.f32 %v6144_v18, %v6143_v17  ;;  %v6146_v20 = vpop.f32.mrb[34].mxu1 }
 0x48e   :  { %v6147_v21 = vpop.f32.mrb[35].mxu1 }
 0x48f   :  { %v3568_v22 = vadd.f32 %v6145_v19, %v3398_v15 }
 0x4ab   :  { %v6165_v23 = vpop.f32.mrb[36].mxu1 }
 0x4ac   :  { %v6166_v24 = vpop.f32.mrb[37].mxu1 }
 0x4ad   :  { %v6167_v26 = vadd.f32 %v6166_v24, %v6165_v23  ;;  %v6168_v28 = vpop.f32.mrb[38].mxu1 }
 0x4ae   :  { %v6169_v29 = vpop.f32.mrb[39].mxu1 }
 0x4af   :  { %v3744_v30 = vadd.f32 %v6167_v26, %v3568_v22 }
 0x4cb   :  { %v6187_v36 = vpop.f32.mrb[40].mxu1 }
 0x4cc   :  { %v6188_v37 = vpop.f32.mrb[41].mxu1 }
 0x4cd   :  { %v6189_v38 = vadd.f32 %v6188_v37, %v6187_v36  ;;  %v6190_v39 = vpop.f32.mrb[42].mxu1 }
 0x4ce   :  { %v6191_v40 = vpop.f32.mrb[43].mxu1 }
 0x4cf   :  { %v3918_v42 = vadd.f32 %v6189_v38, %v3744_v30 }
 0x4eb   :  { %v6209_v45 = vpop.f32.mrb[44].mxu1 }
 0x4ec   :  { %v6210_v46 = vpop.f32.mrb[45].mxu1 }
 0x4ed   :  { %v6211_v47 = vadd.f32 %v6210_v46, %v6209_v45  ;;  %v6212_v48 = vpop.f32.mrb[46].mxu1 }
 0x4ee   :  { %v6213_v49 = vpop.f32.mrb[47].mxu1 }
 0x4ef   :  { %v4092_v50 = vadd.f32 %v6211_v47, %v3918_v42 }
 0x50b   :  { %v6231_v51 = vpop.f32.mrb[48].mxu1 }
 0x50c   :  { %v6232_v52 = vpop.f32.mrb[49].mxu1 }
 0x50d   :  { %v6233_v53 = vadd.f32 %v6232_v52, %v6231_v51  ;;  %v6234_v54 = vpop.f32.mrb[50].mxu1 }
 0x50e   :  { %v6235_v55 = vpop.f32.mrb[51].mxu1 }
 0x50f   :  { %v4266_v56 = vadd.f32 %v6233_v53, %v4092_v50 }
 0x52b   :  { %v6253_v57 = vpop.f32.mrb[52].mxu1 }
 0x52c   :  { %v6254_v58 = vpop.f32.mrb[53].mxu1 }
 0x52d   :  { %v6255_v59 = vadd.f32 %v6254_v58, %v6253_v57  ;;  %v6256_v60 = vpop.f32.mrb[54].mxu1 }
 0x52e   :  { %v6257_v61 = vpop.f32.mrb[55].mxu1 }
 0x52f   :  { %v4440_v62 = vadd.f32 %v6255_v59, %v4266_v56 }
 0x531   :  { %v4614_v63 = vadd.f32 %v7749_v35, %v4440_v62  ;;  %v5941_v35 = vld [vmem:[%s8159_s8] ss:$0 sm:$0xff] }
 0x54b   :  { %v6297_v27 = vpop.f32.mrb[56].mxu1 }
 0x54c   :  { %v6298_v0 = vpop.f32.mrb[57].mxu1 }
 0x54d   :  { %v6299_v1 = vadd.f32 %v6298_v0, %v6297_v27  ;;  %v6300_v2 = vpop.f32.mrb[58].mxu1 }
 0x54e   :  { %v6301_v5 = vpop.f32.mrb[59].mxu1 }
 0x54f   :  { %v4788_v6 = vadd.f32 %v6299_v1, %v4614_v63 }
 0x551   :  { %v4796_v8 = vadd.f32 %v5939_v4, %v4788_v6 }
 0x553   :  { %v4797_v10 = vmax.f32 %v4796_v8, 0.0 }
 0x555   :  { %v4805_v11 = vmul.f32 %v5940_v9, %v4797_v10 }
 0x557   :  { %v4813_v12 = vadd.f32 %v5941_v35, %v4805_v11 }
 0x559   :  { %4814 = vst [vmem:[#allocation5] sm:$0x3] %v4813_v12  ;;  %v4815_v13 = vpack.c.bf16 %v4813_v12, %v4813_v12 }
 0x55b   :  { %6329 = vmatmul.mubr.bf16.vlgmr.msra.gmra.mrb[12].mxu0 %v4815_v13 }
 0x55c   :  { %7069 = shalt.err (!%p7066_p12)
}
 0x55d   :  { %s7070_s21 = scalar_lea.hbm %s8163_s12, 32 }
 0x55e   :  { %p7071_p13 = scmp.ne.s32.totalorder %s8163_s12, %s7070_s21  ;;  %p7074_p0 = scmp.lt.u32.totalorder %s7070_s21, %s8163_s12 }
 0x560   :  { %p7076_p1 = pnand %p7074_p0, %p7071_p13 }
 0x562   :  { %7079 = shalt.err (!%p7076_p1)
}
 0x563   :  { %4939 = dma.vmem_to_hbm [thread:$0]  %s4937_s3, 32, %s8163_s12, [#allocation4]   ;;  %v5942_v14 = vld [vmem:[%s8161_s10] ss:$0 sm:$0xff] }
 0x62e   :  { %v4921_v15 = vpop.f32.mrb[12].mxu0 }
 0x62f   :  { %v4922_v7 = vadd.f32 %v5942_v14, %v4921_v15  ;;  %v6330_v16 = vpop.f32.mrb[13].mxu0 }
 0x630   :  { %v4924_v17 = vpop.f32.mrb[14].mxu0 }
 0x631   :  { %4927 = vst [vmem:[%s8164_s13] sm:$0x3] %v4922_v7  ;;  %v6331_v18 = vpop.f32.mrb[15].mxu0 }
 0x632   :  { %7082 = dma.done.wait [#allocation4], 32  }
 0x633   :  { %7083 = vsyncadd [#allocation4], 4294967264 }
 0x634   :  { %4949 = vsyncpa [#allocation3], 1 }
 0x635   :  { %4950 = vsyncpa [#allocation4], 1 }

</bundles_post_ra>
